<compile_context>
chip_gen: v7x
topology: tpu7x:2x2x1
jax: 0.10.0
libtpu: 0.0.40
codegen_flags: <defaults>
</compile_context>

<pallas_src>
import functools

import numpy as np
import jax
import jax.numpy as jnp
from jax import lax
from jax.experimental import pallas as pl
from jax.experimental.pallas import tpu as pltpu

VIEWS = ("L-CC", "L-MLO", "R-CC", "R-MLO")


# ----------------------------------------------------------------------------
# small int32 helpers (wraparound arithmetic == uint32 bit patterns)
# ----------------------------------------------------------------------------
def _i32c(value):
    """Python uint32 constant -> int32 constant with the same bit pattern."""
    value &= 0xFFFFFFFF
    if value >= (1 << 31):
        value -= 1 << 32
    return jnp.int32(value)


def _mix32(x, salt):
    """murmur3-style avalanche hash of an int32 counter lattice."""
    x = x ^ salt
    x = x * _i32c(0xCC9E2D51)
    x = x ^ lax.shift_right_logical(x, jnp.int32(16))
    x = x * _i32c(0x85EBCA6B)
    x = x ^ lax.shift_right_logical(x, jnp.int32(13))
    x = x * _i32c(0xC2B2AE35)
    x = x ^ lax.shift_right_logical(x, jnp.int32(16))
    return x


def _uniform_01(bits):
    """Map hashed bits to a float32 uniform in the open interval (0, 1)."""
    b23 = lax.shift_right_logical(bits, jnp.int32(9))            # in [0, 2^23)
    return (b23.astype(jnp.float32) + 0.5) * jnp.float32(1.0 / (1 << 23))


# Acklam's rational approximation of the inverse normal CDF (only log/sqrt/arith,
# all of which lower cleanly on the TPU VPU/EUP).
_NDTRI_A = (-3.969683028665376e+01, 2.209460984245205e+02, -2.759285104469687e+02,
            1.383577518672690e+02, -3.066479806614716e+01, 2.506628277459239e+00)
_NDTRI_B = (-5.447609879822406e+01, 1.615858368580409e+02, -1.556989798598866e+02,
            6.680131188771972e+01, -1.328068155288572e+01)
_NDTRI_C = (-7.784894002430293e-03, -3.223964580411365e-01, -2.400758277161838e+00,
            -2.549732539343734e+00, 4.374664141464968e+00, 2.938163982698783e+00)
_NDTRI_D = (7.784695709041462e-03, 3.224671290700398e-01, 2.445134137142996e+00,
            3.754408661907416e+00)


def _ndtri(p):
    a0, a1, a2, a3, a4, a5 = _NDTRI_A
    b0, b1, b2, b3, b4 = _NDTRI_B
    c0, c1, c2, c3, c4, c5 = _NDTRI_C
    d0, d1, d2, d3 = _NDTRI_D
    p_low = 0.02425

    # central region
    q = p - 0.5
    r = q * q
    num = ((((a0 * r + a1) * r + a2) * r + a3) * r + a4) * r + a5
    den = ((((b0 * r + b1) * r + b2) * r + b3) * r + b4) * r + 1.0
    x_mid = q * num / den

    # lower tail (p is always in (0,1) by construction, so logs are finite)
    t_lo = jnp.sqrt(-2.0 * jnp.log(p))
    num_lo = ((((c0 * t_lo + c1) * t_lo + c2) * t_lo + c3) * t_lo + c4) * t_lo + c5
    den_lo = (((d0 * t_lo + d1) * t_lo + d2) * t_lo + d3) * t_lo + 1.0
    x_lo = num_lo / den_lo

    # upper tail
    t_hi = jnp.sqrt(-2.0 * jnp.log(1.0 - p))
    num_hi = ((((c0 * t_hi + c1) * t_hi + c2) * t_hi + c3) * t_hi + c4) * t_hi + c5
    den_hi = (((d0 * t_hi + d1) * t_hi + d2) * t_hi + d3) * t_hi + 1.0
    x_hi = -num_hi / den_hi

    return jnp.where(p < p_low, x_lo, jnp.where(p > 1.0 - p_low, x_hi, x_mid))


# ----------------------------------------------------------------------------
# Pallas kernel: one grid step adds noise to one row-block of all 4 views.
# ----------------------------------------------------------------------------
def _noise_kernel(seed_ref, *refs, n_views, std, block_rows, lanes):
    in_refs = refs[:n_views]
    out_refs = refs[n_views:]

    seed = seed_ref[0]                       # scalar-prefetched SMEM seed
    pid = pl.program_id(0)

    # Unique int32 counter per element of this block (shared across views; each
    # view gets its own salt so the streams are independent).
    row = lax.broadcasted_iota(jnp.int32, (block_rows, lanes), 0)
    col = lax.broadcasted_iota(jnp.int32, (block_rows, lanes), 1)
    idx = pid * jnp.int32(block_rows * lanes) + row * jnp.int32(lanes) + col

    for v in range(n_views):
        salt = seed * _i32c(0x9E3779B9) + _i32c((v + 1) * 0x85EBCA6B)
        z = _ndtri(_uniform_01(_mix32(idx, salt)))           # ~N(0, 1)
        x = in_refs[v][...].astype(jnp.float32)
        out_refs[v][...] = (x + jnp.float32(std) * z).astype(out_refs[v].dtype)


def _choose_layout(total, itemsize, target_block_bytes=256 * 1024):
    """Pick a lane-dense 2-D factorization (rows, lanes) of a flattened view and
    a row-block size (~target_block_bytes per block)."""
    lanes = None
    for cand in (1024, 512, 256, 128):           # prefer rows >= 8 (full sublanes)
        if total % cand == 0 and total // cand >= 8:
            lanes = cand
            break
    if lanes is None:
        for cand in (1024, 512, 256, 128):
            if total % cand == 0:
                lanes = cand
                break
    if lanes is None:
        # TODO(synk): totals not divisible by 128 fall back to one (1, total) block.
        return 1, total, 1
    rows = total // lanes
    cap = max(8, (target_block_bytes // (lanes * itemsize)) // 8 * 8)
    block_rows = rows if rows <= cap else cap    # full dim, or a multiple of 8
    return rows, lanes, block_rows


def all_views_gaussian_noise(views, gaussian_noise_std, seed=0):
    """Add N(0, std^2) noise to each of the 4 views with a single pallas_call."""
    arrs = [views[n] for n in VIEWS]
    shape, dtype = arrs[0].shape, arrs[0].dtype
    for a in arrs:
        if a.shape != shape or a.dtype != dtype:
            raise ValueError("all views must share shape and dtype")

    total = int(np.prod(shape))
    rows, lanes, block_rows = _choose_layout(total, jnp.dtype(dtype).itemsize)
    flat = [a.reshape(rows, lanes) for a in arrs]        # contiguous reshape: no HBM copy
    grid = (pl.cdiv(rows, block_rows),)

    tile = pl.BlockSpec((block_rows, lanes), lambda i, seed_ref: (i, 0))
    kernel = functools.partial(
        _noise_kernel,
        n_views=len(arrs),
        std=float(gaussian_noise_std),
        block_rows=block_rows,
        lanes=lanes,
    )
    seed_arr = jnp.array([seed], dtype=jnp.int32)

    outs = pl.pallas_call(
        kernel,
        out_shape=[jax.ShapeDtypeStruct((rows, lanes), dtype)] * len(arrs),
        grid_spec=pltpu.PrefetchScalarGridSpec(
            num_scalar_prefetch=1,
            grid=grid,
            in_specs=[tile] * len(arrs),
            out_specs=[tile] * len(arrs),
        ),
        compiler_params=pltpu.CompilerParams(
            dimension_semantics=("parallel",)),
    )(seed_arr, *flat)

    return {n: o.reshape(shape) for n, o in zip(VIEWS, outs)}


class AllViewsGaussianNoise:
    """Add gaussian noise across all 4 views (Pallas TPU). No parameters."""

    VIEWS = VIEWS

    def __init__(self, gaussian_noise_std, device=None, seed=0):
        self.gaussian_noise_std = gaussian_noise_std
        self.device = device            # unused on TPU (kept for signature parity)
        self._base_seed = int(seed)
        self._calls = 0

    def __call__(self, x):
        if not self.gaussian_noise_std:
            return x
        seed = self._base_seed + self._calls   # fresh noise each call, no recompile
        self._calls += 1
        return all_views_gaussian_noise(x, self.gaussian_noise_std, seed)


if __name__ == "__main__":
    key = jax.random.PRNGKey(0)
    shape = (2, 4, 16, 16)                     # N, C, H, W (PyTorch convention)
    keys = jax.random.split(key, len(VIEWS))
    x = {v: jax.random.normal(k, shape, dtype=jnp.float32)
         for v, k in zip(VIEWS, keys)}

    std = 0.01
    model = AllViewsGaussianNoise(std, device=None)
    out = model(x)
    out = jax.block_until_ready(out)

    # falsy std -> identity (matches the torch module's early return)
    assert AllViewsGaussianNoise(0.0)(x) is x

    # statistical checks on the added noise
    zs = []
    for v in VIEWS:
        assert out[v].shape == shape and out[v].dtype == x[v].dtype
        z = np.asarray((out[v] - x[v]) / std).ravel()
        zs.append(z)
    assert not np.allclose(zs[0], zs[1])       # views get independent noise
    allz = np.concatenate(zs)                  # 8192 samples total
    assert np.isfinite(allz).all()
    assert abs(float(allz.mean())) < 0.1, float(allz.mean())
    assert abs(float(allz.std()) - 1.0) < 0.12, float(allz.std())
    assert float(np.abs(allz).max()) < 6.0

    print("KERNEL_OK")
</pallas_src>

<mosaic_0001>
module attributes {stable_mosaic.version = 11 : i64} {
  func.func @_noise_kernel(%arg0: i32, %arg1: memref<1xi32, #tpu.memory_space<smem>>, %arg2: memref<8x256xf32, #tpu.memory_space<vmem>>, %arg3: memref<8x256xf32, #tpu.memory_space<vmem>>, %arg4: memref<8x256xf32, #tpu.memory_space<vmem>>, %arg5: memref<8x256xf32, #tpu.memory_space<vmem>>, %arg6: memref<8x256xf32, #tpu.memory_space<vmem>>, %arg7: memref<8x256xf32, #tpu.memory_space<vmem>>, %arg8: memref<8x256xf32, #tpu.memory_space<vmem>>, %arg9: memref<8x256xf32, #tpu.memory_space<vmem>>) attributes {dimension_semantics = [#tpu.dimension_semantics<parallel>], iteration_bounds = array<i64: 1>, scalar_prefetch = 1 : i64, scratch_operands = 0 : i64, tpu.core_type = #tpu.core_type<tc>, window_params = [{transform_indices = @transform_0, window_bounds = array<i64: 8, 256>}, {transform_indices = @transform_1, window_bounds = array<i64: 8, 256>}, {transform_indices = @transform_2, window_bounds = array<i64: 8, 256>}, {transform_indices = @transform_3, window_bounds = array<i64: 8, 256>}, {transform_indices = @transform_4, window_bounds = array<i64: 8, 256>}, {transform_indices = @transform_5, window_bounds = array<i64: 8, 256>}, {transform_indices = @transform_6, window_bounds = array<i64: 8, 256>}, {transform_indices = @transform_7, window_bounds = array<i64: 8, 256>}]} {
    %c0 = arith.constant 0 : index
    %0 = memref.load %arg1[%c0] : memref<1xi32, #tpu.memory_space<smem>>
    %1 = tpu.iota {dimensions = array<i32: 0>} : vector<8x256xi32>
    %2 = tpu.iota {dimensions = array<i32: 1>} : vector<8x256xi32>
    %c2048_i32 = arith.constant 2048 : i32
    %3 = arith.muli %arg0, %c2048_i32 : i32
    %c256_i32 = arith.constant 256 : i32
    %4 = vector.broadcast %c256_i32 : i32 to vector<8x256xi32>
    %5 = arith.muli %1, %4 : vector<8x256xi32>
    %6 = vector.broadcast %3 : i32 to vector<8x256xi32>
    %7 = arith.addi %6, %5 : vector<8x256xi32>
    %8 = arith.addi %7, %2 : vector<8x256xi32>
    %c-1640531527_i32 = arith.constant -1640531527 : i32
    %9 = arith.muli %0, %c-1640531527_i32 : i32
    %c-2048144789_i32 = arith.constant -2048144789 : i32
    %10 = arith.addi %9, %c-2048144789_i32 : i32
    %11 = vector.broadcast %10 : i32 to vector<8x256xi32>
    %12 = arith.xori %8, %11 : vector<8x256xi32>
    %c-862048943_i32 = arith.constant -862048943 : i32
    %13 = vector.broadcast %c-862048943_i32 : i32 to vector<8x256xi32>
    %14 = arith.muli %12, %13 : vector<8x256xi32>
    %c16_i32 = arith.constant 16 : i32
    %15 = vector.broadcast %c16_i32 : i32 to vector<8x256xi32>
    %16 = arith.shrui %14, %15 : vector<8x256xi32>
    %17 = arith.xori %14, %16 : vector<8x256xi32>
    %c-2048144789_i32_0 = arith.constant -2048144789 : i32
    %18 = vector.broadcast %c-2048144789_i32_0 : i32 to vector<8x256xi32>
    %19 = arith.muli %17, %18 : vector<8x256xi32>
    %c13_i32 = arith.constant 13 : i32
    %20 = vector.broadcast %c13_i32 : i32 to vector<8x256xi32>
    %21 = arith.shrui %19, %20 : vector<8x256xi32>
    %22 = arith.xori %19, %21 : vector<8x256xi32>
    %c-1028477387_i32 = arith.constant -1028477387 : i32
    %23 = vector.broadcast %c-1028477387_i32 : i32 to vector<8x256xi32>
    %24 = arith.muli %22, %23 : vector<8x256xi32>
    %c16_i32_1 = arith.constant 16 : i32
    %25 = vector.broadcast %c16_i32_1 : i32 to vector<8x256xi32>
    %26 = arith.shrui %24, %25 : vector<8x256xi32>
    %27 = arith.xori %24, %26 : vector<8x256xi32>
    %c9_i32 = arith.constant 9 : i32
    %28 = vector.broadcast %c9_i32 : i32 to vector<8x256xi32>
    %29 = arith.shrui %27, %28 : vector<8x256xi32>
    %30 = arith.sitofp %29 : vector<8x256xi32> to vector<8x256xf32>
    %cst = arith.constant 5.000000e-01 : f32
    %31 = vector.broadcast %cst : f32 to vector<8x256xf32>
    %32 = arith.addf %30, %31 : vector<8x256xf32>
    %cst_2 = arith.constant 1.1920929E-7 : f32
    %33 = vector.broadcast %cst_2 : f32 to vector<8x256xf32>
    %34 = arith.mulf %32, %33 : vector<8x256xf32>
    %cst_3 = arith.constant 5.000000e-01 : f32
    %35 = vector.broadcast %cst_3 : f32 to vector<8x256xf32>
    %36 = arith.subf %34, %35 : vector<8x256xf32>
    %37 = arith.mulf %36, %36 : vector<8x256xf32>
    %cst_4 = arith.constant -39.6968307 : f32
    %38 = vector.broadcast %cst_4 : f32 to vector<8x256xf32>
    %39 = arith.mulf %38, %37 : vector<8x256xf32>
    %cst_5 = arith.constant 220.946106 : f32
    %40 = vector.broadcast %cst_5 : f32 to vector<8x256xf32>
    %41 = arith.addf %39, %40 : vector<8x256xf32>
    %42 = arith.mulf %41, %37 : vector<8x256xf32>
    %cst_6 = arith.constant -275.928497 : f32
    %43 = vector.broadcast %cst_6 : f32 to vector<8x256xf32>
    %44 = arith.addf %42, %43 : vector<8x256xf32>
    %45 = arith.mulf %44, %37 : vector<8x256xf32>
    %cst_7 = arith.constant 138.357758 : f32
    %46 = vector.broadcast %cst_7 : f32 to vector<8x256xf32>
    %47 = arith.addf %45, %46 : vector<8x256xf32>
    %48 = arith.mulf %47, %37 : vector<8x256xf32>
    %cst_8 = arith.constant -30.6647987 : f32
    %49 = vector.broadcast %cst_8 : f32 to vector<8x256xf32>
    %50 = arith.addf %48, %49 : vector<8x256xf32>
    %51 = arith.mulf %50, %37 : vector<8x256xf32>
    %cst_9 = arith.constant 2.50662827 : f32
    %52 = vector.broadcast %cst_9 : f32 to vector<8x256xf32>
    %53 = arith.addf %51, %52 : vector<8x256xf32>
    %cst_10 = arith.constant -54.4760971 : f32
    %54 = vector.broadcast %cst_10 : f32 to vector<8x256xf32>
    %55 = arith.mulf %54, %37 : vector<8x256xf32>
    %cst_11 = arith.constant 161.585831 : f32
    %56 = vector.broadcast %cst_11 : f32 to vector<8x256xf32>
    %57 = arith.addf %55, %56 : vector<8x256xf32>
    %58 = arith.mulf %57, %37 : vector<8x256xf32>
    %cst_12 = arith.constant -155.698975 : f32
    %59 = vector.broadcast %cst_12 : f32 to vector<8x256xf32>
    %60 = arith.addf %58, %59 : vector<8x256xf32>
    %61 = arith.mulf %60, %37 : vector<8x256xf32>
    %cst_13 = arith.constant 66.8013153 : f32
    %62 = vector.broadcast %cst_13 : f32 to vector<8x256xf32>
    %63 = arith.addf %61, %62 : vector<8x256xf32>
    %64 = arith.mulf %63, %37 : vector<8x256xf32>
    %cst_14 = arith.constant -13.2806816 : f32
    %65 = vector.broadcast %cst_14 : f32 to vector<8x256xf32>
    %66 = arith.addf %64, %65 : vector<8x256xf32>
    %67 = arith.mulf %66, %37 : vector<8x256xf32>
    %cst_15 = arith.constant 1.000000e+00 : f32
    %68 = vector.broadcast %cst_15 : f32 to vector<8x256xf32>
    %69 = arith.addf %67, %68 : vector<8x256xf32>
    %70 = arith.mulf %36, %53 : vector<8x256xf32>
    %71 = arith.divf %70, %69 : vector<8x256xf32>
    %72 = math.log %34 : vector<8x256xf32>
    %cst_16 = arith.constant -2.000000e+00 : f32
    %73 = vector.broadcast %cst_16 : f32 to vector<8x256xf32>
    %74 = arith.mulf %73, %72 : vector<8x256xf32>
    %75 = math.sqrt %74 : vector<8x256xf32>
    %cst_17 = arith.constant -0.0077848942 : f32
    %76 = vector.broadcast %cst_17 : f32 to vector<8x256xf32>
    %77 = arith.mulf %76, %75 : vector<8x256xf32>
    %cst_18 = arith.constant -0.322396457 : f32
    %78 = vector.broadcast %cst_18 : f32 to vector<8x256xf32>
    %79 = arith.addf %77, %78 : vector<8x256xf32>
    %80 = arith.mulf %79, %75 : vector<8x256xf32>
    %cst_19 = arith.constant -2.40075827 : f32
    %81 = vector.broadcast %cst_19 : f32 to vector<8x256xf32>
    %82 = arith.addf %80, %81 : vector<8x256xf32>
    %83 = arith.mulf %82, %75 : vector<8x256xf32>
    %cst_20 = arith.constant -2.54973245 : f32
    %84 = vector.broadcast %cst_20 : f32 to vector<8x256xf32>
    %85 = arith.addf %83, %84 : vector<8x256xf32>
    %86 = arith.mulf %85, %75 : vector<8x256xf32>
    %cst_21 = arith.constant 4.37466431 : f32
    %87 = vector.broadcast %cst_21 : f32 to vector<8x256xf32>
    %88 = arith.addf %86, %87 : vector<8x256xf32>
    %89 = arith.mulf %88, %75 : vector<8x256xf32>
    %cst_22 = arith.constant 2.938164 : f32
    %90 = vector.broadcast %cst_22 : f32 to vector<8x256xf32>
    %91 = arith.addf %89, %90 : vector<8x256xf32>
    %cst_23 = arith.constant 0.00778469583 : f32
    %92 = vector.broadcast %cst_23 : f32 to vector<8x256xf32>
    %93 = arith.mulf %92, %75 : vector<8x256xf32>
    %cst_24 = arith.constant 0.322467119 : f32
    %94 = vector.broadcast %cst_24 : f32 to vector<8x256xf32>
    %95 = arith.addf %93, %94 : vector<8x256xf32>
    %96 = arith.mulf %95, %75 : vector<8x256xf32>
    %cst_25 = arith.constant 2.44513416 : f32
    %97 = vector.broadcast %cst_25 : f32 to vector<8x256xf32>
    %98 = arith.addf %96, %97 : vector<8x256xf32>
    %99 = arith.mulf %98, %75 : vector<8x256xf32>
    %cst_26 = arith.constant 3.7544086 : f32
    %100 = vector.broadcast %cst_26 : f32 to vector<8x256xf32>
    %101 = arith.addf %99, %100 : vector<8x256xf32>
    %102 = arith.mulf %101, %75 : vector<8x256xf32>
    %cst_27 = arith.constant 1.000000e+00 : f32
    %103 = vector.broadcast %cst_27 : f32 to vector<8x256xf32>
    %104 = arith.addf %102, %103 : vector<8x256xf32>
    %105 = arith.divf %91, %104 : vector<8x256xf32>
    %cst_28 = arith.constant 1.000000e+00 : f32
    %106 = vector.broadcast %cst_28 : f32 to vector<8x256xf32>
    %107 = arith.subf %106, %34 : vector<8x256xf32>
    %108 = math.log %107 : vector<8x256xf32>
    %cst_29 = arith.constant -2.000000e+00 : f32
    %109 = vector.broadcast %cst_29 : f32 to vector<8x256xf32>
    %110 = arith.mulf %109, %108 : vector<8x256xf32>
    %111 = math.sqrt %110 : vector<8x256xf32>
    %cst_30 = arith.constant -0.0077848942 : f32
    %112 = vector.broadcast %cst_30 : f32 to vector<8x256xf32>
    %113 = arith.mulf %112, %111 : vector<8x256xf32>
    %cst_31 = arith.constant -0.322396457 : f32
    %114 = vector.broadcast %cst_31 : f32 to vector<8x256xf32>
    %115 = arith.addf %113, %114 : vector<8x256xf32>
    %116 = arith.mulf %115, %111 : vector<8x256xf32>
    %cst_32 = arith.constant -2.40075827 : f32
    %117 = vector.broadcast %cst_32 : f32 to vector<8x256xf32>
    %118 = arith.addf %116, %117 : vector<8x256xf32>
    %119 = arith.mulf %118, %111 : vector<8x256xf32>
    %cst_33 = arith.constant -2.54973245 : f32
    %120 = vector.broadcast %cst_33 : f32 to vector<8x256xf32>
    %121 = arith.addf %119, %120 : vector<8x256xf32>
    %122 = arith.mulf %121, %111 : vector<8x256xf32>
    %cst_34 = arith.constant 4.37466431 : f32
    %123 = vector.broadcast %cst_34 : f32 to vector<8x256xf32>
    %124 = arith.addf %122, %123 : vector<8x256xf32>
    %125 = arith.mulf %124, %111 : vector<8x256xf32>
    %cst_35 = arith.constant 2.938164 : f32
    %126 = vector.broadcast %cst_35 : f32 to vector<8x256xf32>
    %127 = arith.addf %125, %126 : vector<8x256xf32>
    %cst_36 = arith.constant 0.00778469583 : f32
    %128 = vector.broadcast %cst_36 : f32 to vector<8x256xf32>
    %129 = arith.mulf %128, %111 : vector<8x256xf32>
    %cst_37 = arith.constant 0.322467119 : f32
    %130 = vector.broadcast %cst_37 : f32 to vector<8x256xf32>
    %131 = arith.addf %129, %130 : vector<8x256xf32>
    %132 = arith.mulf %131, %111 : vector<8x256xf32>
    %cst_38 = arith.constant 2.44513416 : f32
    %133 = vector.broadcast %cst_38 : f32 to vector<8x256xf32>
    %134 = arith.addf %132, %133 : vector<8x256xf32>
    %135 = arith.mulf %134, %111 : vector<8x256xf32>
    %cst_39 = arith.constant 3.7544086 : f32
    %136 = vector.broadcast %cst_39 : f32 to vector<8x256xf32>
    %137 = arith.addf %135, %136 : vector<8x256xf32>
    %138 = arith.mulf %137, %111 : vector<8x256xf32>
    %cst_40 = arith.constant 1.000000e+00 : f32
    %139 = vector.broadcast %cst_40 : f32 to vector<8x256xf32>
    %140 = arith.addf %138, %139 : vector<8x256xf32>
    %cst_41 = arith.constant 0.000000e+00 : f32
    %141 = vector.broadcast %cst_41 : f32 to vector<8x256xf32>
    %142 = arith.subf %141, %127 : vector<8x256xf32>
    %143 = arith.divf %142, %140 : vector<8x256xf32>
    %cst_42 = arith.constant 2.425000e-02 : f32
    %144 = vector.broadcast %cst_42 : f32 to vector<8x256xf32>
    %145 = arith.cmpf olt, %34, %144 : vector<8x256xf32>
    %cst_43 = arith.constant 9.757500e-01 : f32
    %146 = vector.broadcast %cst_43 : f32 to vector<8x256xf32>
    %147 = arith.cmpf ogt, %34, %146 : vector<8x256xf32>
    %148 = arith.select %147, %143, %71 : vector<8x256xi1>, vector<8x256xf32>
    %149 = arith.select %145, %105, %148 : vector<8x256xi1>, vector<8x256xf32>
    %c0_44 = arith.constant 0 : index
    %c0_45 = arith.constant 0 : index
    %150 = vector.load %arg2[%c0_44, %c0_45] : memref<8x256xf32, #tpu.memory_space<vmem>>, vector<8x256xf32>
    %cst_46 = arith.constant 0.00999999977 : f32
    %151 = vector.broadcast %cst_46 : f32 to vector<8x256xf32>
    %152 = arith.mulf %151, %149 : vector<8x256xf32>
    %153 = arith.addf %150, %152 : vector<8x256xf32>
    %c0_47 = arith.constant 0 : index
    %c0_48 = arith.constant 0 : index
    %154 = vector.load %arg6[%c0_47, %c0_48] : memref<8x256xf32, #tpu.memory_space<vmem>>, vector<8x256xf32>
    tpu.vector_store %arg6[%c0_47, %c0_48], %153 {strides = array<i32>} : memref<8x256xf32, #tpu.memory_space<vmem>>, vector<8x256xf32>,
    %c-1640531527_i32_49 = arith.constant -1640531527 : i32
    %155 = arith.muli %0, %c-1640531527_i32_49 : i32
    %c198677718_i32 = arith.constant 198677718 : i32
    %156 = arith.addi %155, %c198677718_i32 : i32
    %157 = vector.broadcast %156 : i32 to vector<8x256xi32>
    %158 = arith.xori %8, %157 : vector<8x256xi32>
    %c-862048943_i32_50 = arith.constant -862048943 : i32
    %159 = vector.broadcast %c-862048943_i32_50 : i32 to vector<8x256xi32>
    %160 = arith.muli %158, %159 : vector<8x256xi32>
    %c16_i32_51 = arith.constant 16 : i32
    %161 = vector.broadcast %c16_i32_51 : i32 to vector<8x256xi32>
    %162 = arith.shrui %160, %161 : vector<8x256xi32>
    %163 = arith.xori %160, %162 : vector<8x256xi32>
    %c-2048144789_i32_52 = arith.constant -2048144789 : i32
    %164 = vector.broadcast %c-2048144789_i32_52 : i32 to vector<8x256xi32>
    %165 = arith.muli %163, %164 : vector<8x256xi32>
    %c13_i32_53 = arith.constant 13 : i32
    %166 = vector.broadcast %c13_i32_53 : i32 to vector<8x256xi32>
    %167 = arith.shrui %165, %166 : vector<8x256xi32>
    %168 = arith.xori %165, %167 : vector<8x256xi32>
    %c-1028477387_i32_54 = arith.constant -1028477387 : i32
    %169 = vector.broadcast %c-1028477387_i32_54 : i32 to vector<8x256xi32>
    %170 = arith.muli %168, %169 : vector<8x256xi32>
    %c16_i32_55 = arith.constant 16 : i32
    %171 = vector.broadcast %c16_i32_55 : i32 to vector<8x256xi32>
    %172 = arith.shrui %170, %171 : vector<8x256xi32>
    %173 = arith.xori %170, %172 : vector<8x256xi32>
    %c9_i32_56 = arith.constant 9 : i32
    %174 = vector.broadcast %c9_i32_56 : i32 to vector<8x256xi32>
    %175 = arith.shrui %173, %174 : vector<8x256xi32>
    %176 = arith.sitofp %175 : vector<8x256xi32> to vector<8x256xf32>
    %cst_57 = arith.constant 5.000000e-01 : f32
    %177 = vector.broadcast %cst_57 : f32 to vector<8x256xf32>
    %178 = arith.addf %176, %177 : vector<8x256xf32>
    %cst_58 = arith.constant 1.1920929E-7 : f32
    %179 = vector.broadcast %cst_58 : f32 to vector<8x256xf32>
    %180 = arith.mulf %178, %179 : vector<8x256xf32>
    %cst_59 = arith.constant 5.000000e-01 : f32
    %181 = vector.broadcast %cst_59 : f32 to vector<8x256xf32>
    %182 = arith.subf %180, %181 : vector<8x256xf32>
    %183 = arith.mulf %182, %182 : vector<8x256xf32>
    %cst_60 = arith.constant -39.6968307 : f32
    %184 = vector.broadcast %cst_60 : f32 to vector<8x256xf32>
    %185 = arith.mulf %184, %183 : vector<8x256xf32>
    %cst_61 = arith.constant 220.946106 : f32
    %186 = vector.broadcast %cst_61 : f32 to vector<8x256xf32>
    %187 = arith.addf %185, %186 : vector<8x256xf32>
    %188 = arith.mulf %187, %183 : vector<8x256xf32>
    %cst_62 = arith.constant -275.928497 : f32
    %189 = vector.broadcast %cst_62 : f32 to vector<8x256xf32>
    %190 = arith.addf %188, %189 : vector<8x256xf32>
    %191 = arith.mulf %190, %183 : vector<8x256xf32>
    %cst_63 = arith.constant 138.357758 : f32
    %192 = vector.broadcast %cst_63 : f32 to vector<8x256xf32>
    %193 = arith.addf %191, %192 : vector<8x256xf32>
    %194 = arith.mulf %193, %183 : vector<8x256xf32>
    %cst_64 = arith.constant -30.6647987 : f32
    %195 = vector.broadcast %cst_64 : f32 to vector<8x256xf32>
    %196 = arith.addf %194, %195 : vector<8x256xf32>
    %197 = arith.mulf %196, %183 : vector<8x256xf32>
    %cst_65 = arith.constant 2.50662827 : f32
    %198 = vector.broadcast %cst_65 : f32 to vector<8x256xf32>
    %199 = arith.addf %197, %198 : vector<8x256xf32>
    %cst_66 = arith.constant -54.4760971 : f32
    %200 = vector.broadcast %cst_66 : f32 to vector<8x256xf32>
    %201 = arith.mulf %200, %183 : vector<8x256xf32>
    %cst_67 = arith.constant 161.585831 : f32
    %202 = vector.broadcast %cst_67 : f32 to vector<8x256xf32>
    %203 = arith.addf %201, %202 : vector<8x256xf32>
    %204 = arith.mulf %203, %183 : vector<8x256xf32>
    %cst_68 = arith.constant -155.698975 : f32
    %205 = vector.broadcast %cst_68 : f32 to vector<8x256xf32>
    %206 = arith.addf %204, %205 : vector<8x256xf32>
    %207 = arith.mulf %206, %183 : vector<8x256xf32>
    %cst_69 = arith.constant 66.8013153 : f32
    %208 = vector.broadcast %cst_69 : f32 to vector<8x256xf32>
    %209 = arith.addf %207, %208 : vector<8x256xf32>
    %210 = arith.mulf %209, %183 : vector<8x256xf32>
    %cst_70 = arith.constant -13.2806816 : f32
    %211 = vector.broadcast %cst_70 : f32 to vector<8x256xf32>
    %212 = arith.addf %210, %211 : vector<8x256xf32>
    %213 = arith.mulf %212, %183 : vector<8x256xf32>
    %cst_71 = arith.constant 1.000000e+00 : f32
    %214 = vector.broadcast %cst_71 : f32 to vector<8x256xf32>
    %215 = arith.addf %213, %214 : vector<8x256xf32>
    %216 = arith.mulf %182, %199 : vector<8x256xf32>
    %217 = arith.divf %216, %215 : vector<8x256xf32>
    %218 = math.log %180 : vector<8x256xf32>
    %cst_72 = arith.constant -2.000000e+00 : f32
    %219 = vector.broadcast %cst_72 : f32 to vector<8x256xf32>
    %220 = arith.mulf %219, %218 : vector<8x256xf32>
    %221 = math.sqrt %220 : vector<8x256xf32>
    %cst_73 = arith.constant -0.0077848942 : f32
    %222 = vector.broadcast %cst_73 : f32 to vector<8x256xf32>
    %223 = arith.mulf %222, %221 : vector<8x256xf32>
    %cst_74 = arith.constant -0.322396457 : f32
    %224 = vector.broadcast %cst_74 : f32 to vector<8x256xf32>
    %225 = arith.addf %223, %224 : vector<8x256xf32>
    %226 = arith.mulf %225, %221 : vector<8x256xf32>
    %cst_75 = arith.constant -2.40075827 : f32
    %227 = vector.broadcast %cst_75 : f32 to vector<8x256xf32>
    %228 = arith.addf %226, %227 : vector<8x256xf32>
    %229 = arith.mulf %228, %221 : vector<8x256xf32>
    %cst_76 = arith.constant -2.54973245 : f32
    %230 = vector.broadcast %cst_76 : f32 to vector<8x256xf32>
    %231 = arith.addf %229, %230 : vector<8x256xf32>
    %232 = arith.mulf %231, %221 : vector<8x256xf32>
    %cst_77 = arith.constant 4.37466431 : f32
    %233 = vector.broadcast %cst_77 : f32 to vector<8x256xf32>
    %234 = arith.addf %232, %233 : vector<8x256xf32>
    %235 = arith.mulf %234, %221 : vector<8x256xf32>
    %cst_78 = arith.constant 2.938164 : f32
    %236 = vector.broadcast %cst_78 : f32 to vector<8x256xf32>
    %237 = arith.addf %235, %236 : vector<8x256xf32>
    %cst_79 = arith.constant 0.00778469583 : f32
    %238 = vector.broadcast %cst_79 : f32 to vector<8x256xf32>
    %239 = arith.mulf %238, %221 : vector<8x256xf32>
    %cst_80 = arith.constant 0.322467119 : f32
    %240 = vector.broadcast %cst_80 : f32 to vector<8x256xf32>
    %241 = arith.addf %239, %240 : vector<8x256xf32>
    %242 = arith.mulf %241, %221 : vector<8x256xf32>
    %cst_81 = arith.constant 2.44513416 : f32
    %243 = vector.broadcast %cst_81 : f32 to vector<8x256xf32>
    %244 = arith.addf %242, %243 : vector<8x256xf32>
    %245 = arith.mulf %244, %221 : vector<8x256xf32>
    %cst_82 = arith.constant 3.7544086 : f32
    %246 = vector.broadcast %cst_82 : f32 to vector<8x256xf32>
    %247 = arith.addf %245, %246 : vector<8x256xf32>
    %248 = arith.mulf %247, %221 : vector<8x256xf32>
    %cst_83 = arith.constant 1.000000e+00 : f32
    %249 = vector.broadcast %cst_83 : f32 to vector<8x256xf32>
    %250 = arith.addf %248, %249 : vector<8x256xf32>
    %251 = arith.divf %237, %250 : vector<8x256xf32>
    %cst_84 = arith.constant 1.000000e+00 : f32
    %252 = vector.broadcast %cst_84 : f32 to vector<8x256xf32>
    %253 = arith.subf %252, %180 : vector<8x256xf32>
    %254 = math.log %253 : vector<8x256xf32>
    %cst_85 = arith.constant -2.000000e+00 : f32
    %255 = vector.broadcast %cst_85 : f32 to vector<8x256xf32>
    %256 = arith.mulf %255, %254 : vector<8x256xf32>
    %257 = math.sqrt %256 : vector<8x256xf32>
    %cst_86 = arith.constant -0.0077848942 : f32
    %258 = vector.broadcast %cst_86 : f32 to vector<8x256xf32>
    %259 = arith.mulf %258, %257 : vector<8x256xf32>
    %cst_87 = arith.constant -0.322396457 : f32
    %260 = vector.broadcast %cst_87 : f32 to vector<8x256xf32>
    %261 = arith.addf %259, %260 : vector<8x256xf32>
    %262 = arith.mulf %261, %257 : vector<8x256xf32>
    %cst_88 = arith.constant -2.40075827 : f32
    %263 = vector.broadcast %cst_88 : f32 to vector<8x256xf32>
    %264 = arith.addf %262, %263 : vector<8x256xf32>
    %265 = arith.mulf %264, %257 : vector<8x256xf32>
    %cst_89 = arith.constant -2.54973245 : f32
    %266 = vector.broadcast %cst_89 : f32 to vector<8x256xf32>
    %267 = arith.addf %265, %266 : vector<8x256xf32>
    %268 = arith.mulf %267, %257 : vector<8x256xf32>
    %cst_90 = arith.constant 4.37466431 : f32
    %269 = vector.broadcast %cst_90 : f32 to vector<8x256xf32>
    %270 = arith.addf %268, %269 : vector<8x256xf32>
    %271 = arith.mulf %270, %257 : vector<8x256xf32>
    %cst_91 = arith.constant 2.938164 : f32
    %272 = vector.broadcast %cst_91 : f32 to vector<8x256xf32>
    %273 = arith.addf %271, %272 : vector<8x256xf32>
    %cst_92 = arith.constant 0.00778469583 : f32
    %274 = vector.broadcast %cst_92 : f32 to vector<8x256xf32>
    %275 = arith.mulf %274, %257 : vector<8x256xf32>
    %cst_93 = arith.constant 0.322467119 : f32
    %276 = vector.broadcast %cst_93 : f32 to vector<8x256xf32>
    %277 = arith.addf %275, %276 : vector<8x256xf32>
    %278 = arith.mulf %277, %257 : vector<8x256xf32>
    %cst_94 = arith.constant 2.44513416 : f32
    %279 = vector.broadcast %cst_94 : f32 to vector<8x256xf32>
    %280 = arith.addf %278, %279 : vector<8x256xf32>
    %281 = arith.mulf %280, %257 : vector<8x256xf32>
    %cst_95 = arith.constant 3.7544086 : f32
    %282 = vector.broadcast %cst_95 : f32 to vector<8x256xf32>
    %283 = arith.addf %281, %282 : vector<8x256xf32>
    %284 = arith.mulf %283, %257 : vector<8x256xf32>
    %cst_96 = arith.constant 1.000000e+00 : f32
    %285 = vector.broadcast %cst_96 : f32 to vector<8x256xf32>
    %286 = arith.addf %284, %285 : vector<8x256xf32>
    %cst_97 = arith.constant 0.000000e+00 : f32
    %287 = vector.broadcast %cst_97 : f32 to vector<8x256xf32>
    %288 = arith.subf %287, %273 : vector<8x256xf32>
    %289 = arith.divf %288, %286 : vector<8x256xf32>
    %cst_98 = arith.constant 2.425000e-02 : f32
    %290 = vector.broadcast %cst_98 : f32 to vector<8x256xf32>
    %291 = arith.cmpf olt, %180, %290 : vector<8x256xf32>
    %cst_99 = arith.constant 9.757500e-01 : f32
    %292 = vector.broadcast %cst_99 : f32 to vector<8x256xf32>
    %293 = arith.cmpf ogt, %180, %292 : vector<8x256xf32>
    %294 = arith.select %293, %289, %217 : vector<8x256xi1>, vector<8x256xf32>
    %295 = arith.select %291, %251, %294 : vector<8x256xi1>, vector<8x256xf32>
    %c0_100 = arith.constant 0 : index
    %c0_101 = arith.constant 0 : index
    %296 = vector.load %arg3[%c0_100, %c0_101] : memref<8x256xf32, #tpu.memory_space<vmem>>, vector<8x256xf32>
    %cst_102 = arith.constant 0.00999999977 : f32
    %297 = vector.broadcast %cst_102 : f32 to vector<8x256xf32>
    %298 = arith.mulf %297, %295 : vector<8x256xf32>
    %299 = arith.addf %296, %298 : vector<8x256xf32>
    %c0_103 = arith.constant 0 : index
    %c0_104 = arith.constant 0 : index
    %300 = vector.load %arg7[%c0_103, %c0_104] : memref<8x256xf32, #tpu.memory_space<vmem>>, vector<8x256xf32>
    tpu.vector_store %arg7[%c0_103, %c0_104], %299 {strides = array<i32>} : memref<8x256xf32, #tpu.memory_space<vmem>>, vector<8x256xf32>,
    %c-1640531527_i32_105 = arith.constant -1640531527 : i32
    %301 = arith.muli %0, %c-1640531527_i32_105 : i32
    %c-1849467071_i32 = arith.constant -1849467071 : i32
    %302 = arith.addi %301, %c-1849467071_i32 : i32
    %303 = vector.broadcast %302 : i32 to vector<8x256xi32>
    %304 = arith.xori %8, %303 : vector<8x256xi32>
    %c-862048943_i32_106 = arith.constant -862048943 : i32
    %305 = vector.broadcast %c-862048943_i32_106 : i32 to vector<8x256xi32>
    %306 = arith.muli %304, %305 : vector<8x256xi32>
    %c16_i32_107 = arith.constant 16 : i32
    %307 = vector.broadcast %c16_i32_107 : i32 to vector<8x256xi32>
    %308 = arith.shrui %306, %307 : vector<8x256xi32>
    %309 = arith.xori %306, %308 : vector<8x256xi32>
    %c-2048144789_i32_108 = arith.constant -2048144789 : i32
    %310 = vector.broadcast %c-2048144789_i32_108 : i32 to vector<8x256xi32>
    %311 = arith.muli %309, %310 : vector<8x256xi32>
    %c13_i32_109 = arith.constant 13 : i32
    %312 = vector.broadcast %c13_i32_109 : i32 to vector<8x256xi32>
    %313 = arith.shrui %311, %312 : vector<8x256xi32>
    %314 = arith.xori %311, %313 : vector<8x256xi32>
    %c-1028477387_i32_110 = arith.constant -1028477387 : i32
    %315 = vector.broadcast %c-1028477387_i32_110 : i32 to vector<8x256xi32>
    %316 = arith.muli %314, %315 : vector<8x256xi32>
    %c16_i32_111 = arith.constant 16 : i32
    %317 = vector.broadcast %c16_i32_111 : i32 to vector<8x256xi32>
    %318 = arith.shrui %316, %317 : vector<8x256xi32>
    %319 = arith.xori %316, %318 : vector<8x256xi32>
    %c9_i32_112 = arith.constant 9 : i32
    %320 = vector.broadcast %c9_i32_112 : i32 to vector<8x256xi32>
    %321 = arith.shrui %319, %320 : vector<8x256xi32>
    %322 = arith.sitofp %321 : vector<8x256xi32> to vector<8x256xf32>
    %cst_113 = arith.constant 5.000000e-01 : f32
    %323 = vector.broadcast %cst_113 : f32 to vector<8x256xf32>
    %324 = arith.addf %322, %323 : vector<8x256xf32>
    %cst_114 = arith.constant 1.1920929E-7 : f32
    %325 = vector.broadcast %cst_114 : f32 to vector<8x256xf32>
    %326 = arith.mulf %324, %325 : vector<8x256xf32>
    %cst_115 = arith.constant 5.000000e-01 : f32
    %327 = vector.broadcast %cst_115 : f32 to vector<8x256xf32>
    %328 = arith.subf %326, %327 : vector<8x256xf32>
    %329 = arith.mulf %328, %328 : vector<8x256xf32>
    %cst_116 = arith.constant -39.6968307 : f32
    %330 = vector.broadcast %cst_116 : f32 to vector<8x256xf32>
    %331 = arith.mulf %330, %329 : vector<8x256xf32>
    %cst_117 = arith.constant 220.946106 : f32
    %332 = vector.broadcast %cst_117 : f32 to vector<8x256xf32>
    %333 = arith.addf %331, %332 : vector<8x256xf32>
    %334 = arith.mulf %333, %329 : vector<8x256xf32>
    %cst_118 = arith.constant -275.928497 : f32
    %335 = vector.broadcast %cst_118 : f32 to vector<8x256xf32>
    %336 = arith.addf %334, %335 : vector<8x256xf32>
    %337 = arith.mulf %336, %329 : vector<8x256xf32>
    %cst_119 = arith.constant 138.357758 : f32
    %338 = vector.broadcast %cst_119 : f32 to vector<8x256xf32>
    %339 = arith.addf %337, %338 : vector<8x256xf32>
    %340 = arith.mulf %339, %329 : vector<8x256xf32>
    %cst_120 = arith.constant -30.6647987 : f32
    %341 = vector.broadcast %cst_120 : f32 to vector<8x256xf32>
    %342 = arith.addf %340, %341 : vector<8x256xf32>
    %343 = arith.mulf %342, %329 : vector<8x256xf32>
    %cst_121 = arith.constant 2.50662827 : f32
    %344 = vector.broadcast %cst_121 : f32 to vector<8x256xf32>
    %345 = arith.addf %343, %344 : vector<8x256xf32>
    %cst_122 = arith.constant -54.4760971 : f32
    %346 = vector.broadcast %cst_122 : f32 to vector<8x256xf32>
    %347 = arith.mulf %346, %329 : vector<8x256xf32>
    %cst_123 = arith.constant 161.585831 : f32
    %348 = vector.broadcast %cst_123 : f32 to vector<8x256xf32>
    %349 = arith.addf %347, %348 : vector<8x256xf32>
    %350 = arith.mulf %349, %329 : vector<8x256xf32>
    %cst_124 = arith.constant -155.698975 : f32
    %351 = vector.broadcast %cst_124 : f32 to vector<8x256xf32>
    %352 = arith.addf %350, %351 : vector<8x256xf32>
    %353 = arith.mulf %352, %329 : vector<8x256xf32>
    %cst_125 = arith.constant 66.8013153 : f32
    %354 = vector.broadcast %cst_125 : f32 to vector<8x256xf32>
    %355 = arith.addf %353, %354 : vector<8x256xf32>
    %356 = arith.mulf %355, %329 : vector<8x256xf32>
    %cst_126 = arith.constant -13.2806816 : f32
    %357 = vector.broadcast %cst_126 : f32 to vector<8x256xf32>
    %358 = arith.addf %356, %357 : vector<8x256xf32>
    %359 = arith.mulf %358, %329 : vector<8x256xf32>
    %cst_127 = arith.constant 1.000000e+00 : f32
    %360 = vector.broadcast %cst_127 : f32 to vector<8x256xf32>
    %361 = arith.addf %359, %360 : vector<8x256xf32>
    %362 = arith.mulf %328, %345 : vector<8x256xf32>
    %363 = arith.divf %362, %361 : vector<8x256xf32>
    %364 = math.log %326 : vector<8x256xf32>
    %cst_128 = arith.constant -2.000000e+00 : f32
    %365 = vector.broadcast %cst_128 : f32 to vector<8x256xf32>
    %366 = arith.mulf %365, %364 : vector<8x256xf32>
    %367 = math.sqrt %366 : vector<8x256xf32>
    %cst_129 = arith.constant -0.0077848942 : f32
    %368 = vector.broadcast %cst_129 : f32 to vector<8x256xf32>
    %369 = arith.mulf %368, %367 : vector<8x256xf32>
    %cst_130 = arith.constant -0.322396457 : f32
    %370 = vector.broadcast %cst_130 : f32 to vector<8x256xf32>
    %371 = arith.addf %369, %370 : vector<8x256xf32>
    %372 = arith.mulf %371, %367 : vector<8x256xf32>
    %cst_131 = arith.constant -2.40075827 : f32
    %373 = vector.broadcast %cst_131 : f32 to vector<8x256xf32>
    %374 = arith.addf %372, %373 : vector<8x256xf32>
    %375 = arith.mulf %374, %367 : vector<8x256xf32>
    %cst_132 = arith.constant -2.54973245 : f32
    %376 = vector.broadcast %cst_132 : f32 to vector<8x256xf32>
    %377 = arith.addf %375, %376 : vector<8x256xf32>
    %378 = arith.mulf %377, %367 : vector<8x256xf32>
    %cst_133 = arith.constant 4.37466431 : f32
    %379 = vector.broadcast %cst_133 : f32 to vector<8x256xf32>
    %380 = arith.addf %378, %379 : vector<8x256xf32>
    %381 = arith.mulf %380, %367 : vector<8x256xf32>
    %cst_134 = arith.constant 2.938164 : f32
    %382 = vector.broadcast %cst_134 : f32 to vector<8x256xf32>
    %383 = arith.addf %381, %382 : vector<8x256xf32>
    %cst_135 = arith.constant 0.00778469583 : f32
    %384 = vector.broadcast %cst_135 : f32 to vector<8x256xf32>
    %385 = arith.mulf %384, %367 : vector<8x256xf32>
    %cst_136 = arith.constant 0.322467119 : f32
    %386 = vector.broadcast %cst_136 : f32 to vector<8x256xf32>
    %387 = arith.addf %385, %386 : vector<8x256xf32>
    %388 = arith.mulf %387, %367 : vector<8x256xf32>
    %cst_137 = arith.constant 2.44513416 : f32
    %389 = vector.broadcast %cst_137 : f32 to vector<8x256xf32>
    %390 = arith.addf %388, %389 : vector<8x256xf32>
    %391 = arith.mulf %390, %367 : vector<8x256xf32>
    %cst_138 = arith.constant 3.7544086 : f32
    %392 = vector.broadcast %cst_138 : f32 to vector<8x256xf32>
    %393 = arith.addf %391, %392 : vector<8x256xf32>
    %394 = arith.mulf %393, %367 : vector<8x256xf32>
    %cst_139 = arith.constant 1.000000e+00 : f32
    %395 = vector.broadcast %cst_139 : f32 to vector<8x256xf32>
    %396 = arith.addf %394, %395 : vector<8x256xf32>
    %397 = arith.divf %383, %396 : vector<8x256xf32>
    %cst_140 = arith.constant 1.000000e+00 : f32
    %398 = vector.broadcast %cst_140 : f32 to vector<8x256xf32>
    %399 = arith.subf %398, %326 : vector<8x256xf32>
    %400 = math.log %399 : vector<8x256xf32>
    %cst_141 = arith.constant -2.000000e+00 : f32
    %401 = vector.broadcast %cst_141 : f32 to vector<8x256xf32>
    %402 = arith.mulf %401, %400 : vector<8x256xf32>
    %403 = math.sqrt %402 : vector<8x256xf32>
    %cst_142 = arith.constant -0.0077848942 : f32
    %404 = vector.broadcast %cst_142 : f32 to vector<8x256xf32>
    %405 = arith.mulf %404, %403 : vector<8x256xf32>
    %cst_143 = arith.constant -0.322396457 : f32
    %406 = vector.broadcast %cst_143 : f32 to vector<8x256xf32>
    %407 = arith.addf %405, %406 : vector<8x256xf32>
    %408 = arith.mulf %407, %403 : vector<8x256xf32>
    %cst_144 = arith.constant -2.40075827 : f32
    %409 = vector.broadcast %cst_144 : f32 to vector<8x256xf32>
    %410 = arith.addf %408, %409 : vector<8x256xf32>
    %411 = arith.mulf %410, %403 : vector<8x256xf32>
    %cst_145 = arith.constant -2.54973245 : f32
    %412 = vector.broadcast %cst_145 : f32 to vector<8x256xf32>
    %413 = arith.addf %411, %412 : vector<8x256xf32>
    %414 = arith.mulf %413, %403 : vector<8x256xf32>
    %cst_146 = arith.constant 4.37466431 : f32
    %415 = vector.broadcast %cst_146 : f32 to vector<8x256xf32>
    %416 = arith.addf %414, %415 : vector<8x256xf32>
    %417 = arith.mulf %416, %403 : vector<8x256xf32>
    %cst_147 = arith.constant 2.938164 : f32
    %418 = vector.broadcast %cst_147 : f32 to vector<8x256xf32>
    %419 = arith.addf %417, %418 : vector<8x256xf32>
    %cst_148 = arith.constant 0.00778469583 : f32
    %420 = vector.broadcast %cst_148 : f32 to vector<8x256xf32>
    %421 = arith.mulf %420, %403 : vector<8x256xf32>
    %cst_149 = arith.constant 0.322467119 : f32
    %422 = vector.broadcast %cst_149 : f32 to vector<8x256xf32>
    %423 = arith.addf %421, %422 : vector<8x256xf32>
    %424 = arith.mulf %423, %403 : vector<8x256xf32>
    %cst_150 = arith.constant 2.44513416 : f32
    %425 = vector.broadcast %cst_150 : f32 to vector<8x256xf32>
    %426 = arith.addf %424, %425 : vector<8x256xf32>
    %427 = arith.mulf %426, %403 : vector<8x256xf32>
    %cst_151 = arith.constant 3.7544086 : f32
    %428 = vector.broadcast %cst_151 : f32 to vector<8x256xf32>
    %429 = arith.addf %427, %428 : vector<8x256xf32>
    %430 = arith.mulf %429, %403 : vector<8x256xf32>
    %cst_152 = arith.constant 1.000000e+00 : f32
    %431 = vector.broadcast %cst_152 : f32 to vector<8x256xf32>
    %432 = arith.addf %430, %431 : vector<8x256xf32>
    %cst_153 = arith.constant 0.000000e+00 : f32
    %433 = vector.broadcast %cst_153 : f32 to vector<8x256xf32>
    %434 = arith.subf %433, %419 : vector<8x256xf32>
    %435 = arith.divf %434, %432 : vector<8x256xf32>
    %cst_154 = arith.constant 2.425000e-02 : f32
    %436 = vector.broadcast %cst_154 : f32 to vector<8x256xf32>
    %437 = arith.cmpf olt, %326, %436 : vector<8x256xf32>
    %cst_155 = arith.constant 9.757500e-01 : f32
    %438 = vector.broadcast %cst_155 : f32 to vector<8x256xf32>
    %439 = arith.cmpf ogt, %326, %438 : vector<8x256xf32>
    %440 = arith.select %439, %435, %363 : vector<8x256xi1>, vector<8x256xf32>
    %441 = arith.select %437, %397, %440 : vector<8x256xi1>, vector<8x256xf32>
    %c0_156 = arith.constant 0 : index
    %c0_157 = arith.constant 0 : index
    %442 = vector.load %arg4[%c0_156, %c0_157] : memref<8x256xf32, #tpu.memory_space<vmem>>, vector<8x256xf32>
    %cst_158 = arith.constant 0.00999999977 : f32
    %443 = vector.broadcast %cst_158 : f32 to vector<8x256xf32>
    %444 = arith.mulf %443, %441 : vector<8x256xf32>
    %445 = arith.addf %442, %444 : vector<8x256xf32>
    %c0_159 = arith.constant 0 : index
    %c0_160 = arith.constant 0 : index
    %446 = vector.load %arg8[%c0_159, %c0_160] : memref<8x256xf32, #tpu.memory_space<vmem>>, vector<8x256xf32>
    tpu.vector_store %arg8[%c0_159, %c0_160], %445 {strides = array<i32>} : memref<8x256xf32, #tpu.memory_space<vmem>>, vector<8x256xf32>,
    %c-1640531527_i32_161 = arith.constant -1640531527 : i32
    %447 = arith.muli %0, %c-1640531527_i32_161 : i32
    %c397355436_i32 = arith.constant 397355436 : i32
    %448 = arith.addi %447, %c397355436_i32 : i32
    %449 = vector.broadcast %448 : i32 to vector<8x256xi32>
    %450 = arith.xori %8, %449 : vector<8x256xi32>
    %c-862048943_i32_162 = arith.constant -862048943 : i32
    %451 = vector.broadcast %c-862048943_i32_162 : i32 to vector<8x256xi32>
    %452 = arith.muli %450, %451 : vector<8x256xi32>
    %c16_i32_163 = arith.constant 16 : i32
    %453 = vector.broadcast %c16_i32_163 : i32 to vector<8x256xi32>
    %454 = arith.shrui %452, %453 : vector<8x256xi32>
    %455 = arith.xori %452, %454 : vector<8x256xi32>
    %c-2048144789_i32_164 = arith.constant -2048144789 : i32
    %456 = vector.broadcast %c-2048144789_i32_164 : i32 to vector<8x256xi32>
    %457 = arith.muli %455, %456 : vector<8x256xi32>
    %c13_i32_165 = arith.constant 13 : i32
    %458 = vector.broadcast %c13_i32_165 : i32 to vector<8x256xi32>
    %459 = arith.shrui %457, %458 : vector<8x256xi32>
    %460 = arith.xori %457, %459 : vector<8x256xi32>
    %c-1028477387_i32_166 = arith.constant -1028477387 : i32
    %461 = vector.broadcast %c-1028477387_i32_166 : i32 to vector<8x256xi32>
    %462 = arith.muli %460, %461 : vector<8x256xi32>
    %c16_i32_167 = arith.constant 16 : i32
    %463 = vector.broadcast %c16_i32_167 : i32 to vector<8x256xi32>
    %464 = arith.shrui %462, %463 : vector<8x256xi32>
    %465 = arith.xori %462, %464 : vector<8x256xi32>
    %c9_i32_168 = arith.constant 9 : i32
    %466 = vector.broadcast %c9_i32_168 : i32 to vector<8x256xi32>
    %467 = arith.shrui %465, %466 : vector<8x256xi32>
    %468 = arith.sitofp %467 : vector<8x256xi32> to vector<8x256xf32>
    %cst_169 = arith.constant 5.000000e-01 : f32
    %469 = vector.broadcast %cst_169 : f32 to vector<8x256xf32>
    %470 = arith.addf %468, %469 : vector<8x256xf32>
    %cst_170 = arith.constant 1.1920929E-7 : f32
    %471 = vector.broadcast %cst_170 : f32 to vector<8x256xf32>
    %472 = arith.mulf %470, %471 : vector<8x256xf32>
    %cst_171 = arith.constant 5.000000e-01 : f32
    %473 = vector.broadcast %cst_171 : f32 to vector<8x256xf32>
    %474 = arith.subf %472, %473 : vector<8x256xf32>
    %475 = arith.mulf %474, %474 : vector<8x256xf32>
    %cst_172 = arith.constant -39.6968307 : f32
    %476 = vector.broadcast %cst_172 : f32 to vector<8x256xf32>
    %477 = arith.mulf %476, %475 : vector<8x256xf32>
    %cst_173 = arith.constant 220.946106 : f32
    %478 = vector.broadcast %cst_173 : f32 to vector<8x256xf32>
    %479 = arith.addf %477, %478 : vector<8x256xf32>
    %480 = arith.mulf %479, %475 : vector<8x256xf32>
    %cst_174 = arith.constant -275.928497 : f32
    %481 = vector.broadcast %cst_174 : f32 to vector<8x256xf32>
    %482 = arith.addf %480, %481 : vector<8x256xf32>
    %483 = arith.mulf %482, %475 : vector<8x256xf32>
    %cst_175 = arith.constant 138.357758 : f32
    %484 = vector.broadcast %cst_175 : f32 to vector<8x256xf32>
    %485 = arith.addf %483, %484 : vector<8x256xf32>
    %486 = arith.mulf %485, %475 : vector<8x256xf32>
    %cst_176 = arith.constant -30.6647987 : f32
    %487 = vector.broadcast %cst_176 : f32 to vector<8x256xf32>
    %488 = arith.addf %486, %487 : vector<8x256xf32>
    %489 = arith.mulf %488, %475 : vector<8x256xf32>
    %cst_177 = arith.constant 2.50662827 : f32
    %490 = vector.broadcast %cst_177 : f32 to vector<8x256xf32>
    %491 = arith.addf %489, %490 : vector<8x256xf32>
    %cst_178 = arith.constant -54.4760971 : f32
    %492 = vector.broadcast %cst_178 : f32 to vector<8x256xf32>
    %493 = arith.mulf %492, %475 : vector<8x256xf32>
    %cst_179 = arith.constant 161.585831 : f32
    %494 = vector.broadcast %cst_179 : f32 to vector<8x256xf32>
    %495 = arith.addf %493, %494 : vector<8x256xf32>
    %496 = arith.mulf %495, %475 : vector<8x256xf32>
    %cst_180 = arith.constant -155.698975 : f32
    %497 = vector.broadcast %cst_180 : f32 to vector<8x256xf32>
    %498 = arith.addf %496, %497 : vector<8x256xf32>
    %499 = arith.mulf %498, %475 : vector<8x256xf32>
    %cst_181 = arith.constant 66.8013153 : f32
    %500 = vector.broadcast %cst_181 : f32 to vector<8x256xf32>
    %501 = arith.addf %499, %500 : vector<8x256xf32>
    %502 = arith.mulf %501, %475 : vector<8x256xf32>
    %cst_182 = arith.constant -13.2806816 : f32
    %503 = vector.broadcast %cst_182 : f32 to vector<8x256xf32>
    %504 = arith.addf %502, %503 : vector<8x256xf32>
    %505 = arith.mulf %504, %475 : vector<8x256xf32>
    %cst_183 = arith.constant 1.000000e+00 : f32
    %506 = vector.broadcast %cst_183 : f32 to vector<8x256xf32>
    %507 = arith.addf %505, %506 : vector<8x256xf32>
    %508 = arith.mulf %474, %491 : vector<8x256xf32>
    %509 = arith.divf %508, %507 : vector<8x256xf32>
    %510 = math.log %472 : vector<8x256xf32>
    %cst_184 = arith.constant -2.000000e+00 : f32
    %511 = vector.broadcast %cst_184 : f32 to vector<8x256xf32>
    %512 = arith.mulf %511, %510 : vector<8x256xf32>
    %513 = math.sqrt %512 : vector<8x256xf32>
    %cst_185 = arith.constant -0.0077848942 : f32
    %514 = vector.broadcast %cst_185 : f32 to vector<8x256xf32>
    %515 = arith.mulf %514, %513 : vector<8x256xf32>
    %cst_186 = arith.constant -0.322396457 : f32
    %516 = vector.broadcast %cst_186 : f32 to vector<8x256xf32>
    %517 = arith.addf %515, %516 : vector<8x256xf32>
    %518 = arith.mulf %517, %513 : vector<8x256xf32>
    %cst_187 = arith.constant -2.40075827 : f32
    %519 = vector.broadcast %cst_187 : f32 to vector<8x256xf32>
    %520 = arith.addf %518, %519 : vector<8x256xf32>
    %521 = arith.mulf %520, %513 : vector<8x256xf32>
    %cst_188 = arith.constant -2.54973245 : f32
    %522 = vector.broadcast %cst_188 : f32 to vector<8x256xf32>
    %523 = arith.addf %521, %522 : vector<8x256xf32>
    %524 = arith.mulf %523, %513 : vector<8x256xf32>
    %cst_189 = arith.constant 4.37466431 : f32
    %525 = vector.broadcast %cst_189 : f32 to vector<8x256xf32>
    %526 = arith.addf %524, %525 : vector<8x256xf32>
    %527 = arith.mulf %526, %513 : vector<8x256xf32>
    %cst_190 = arith.constant 2.938164 : f32
    %528 = vector.broadcast %cst_190 : f32 to vector<8x256xf32>
    %529 = arith.addf %527, %528 : vector<8x256xf32>
    %cst_191 = arith.constant 0.00778469583 : f32
    %530 = vector.broadcast %cst_191 : f32 to vector<8x256xf32>
    %531 = arith.mulf %530, %513 : vector<8x256xf32>
    %cst_192 = arith.constant 0.322467119 : f32
    %532 = vector.broadcast %cst_192 : f32 to vector<8x256xf32>
    %533 = arith.addf %531, %532 : vector<8x256xf32>
    %534 = arith.mulf %533, %513 : vector<8x256xf32>
    %cst_193 = arith.constant 2.44513416 : f32
    %535 = vector.broadcast %cst_193 : f32 to vector<8x256xf32>
    %536 = arith.addf %534, %535 : vector<8x256xf32>
    %537 = arith.mulf %536, %513 : vector<8x256xf32>
    %cst_194 = arith.constant 3.7544086 : f32
    %538 = vector.broadcast %cst_194 : f32 to vector<8x256xf32>
    %539 = arith.addf %537, %538 : vector<8x256xf32>
    %540 = arith.mulf %539, %513 : vector<8x256xf32>
    %cst_195 = arith.constant 1.000000e+00 : f32
    %541 = vector.broadcast %cst_195 : f32 to vector<8x256xf32>
    %542 = arith.addf %540, %541 : vector<8x256xf32>
    %543 = arith.divf %529, %542 : vector<8x256xf32>
    %cst_196 = arith.constant 1.000000e+00 : f32
    %544 = vector.broadcast %cst_196 : f32 to vector<8x256xf32>
    %545 = arith.subf %544, %472 : vector<8x256xf32>
    %546 = math.log %545 : vector<8x256xf32>
    %cst_197 = arith.constant -2.000000e+00 : f32
    %547 = vector.broadcast %cst_197 : f32 to vector<8x256xf32>
    %548 = arith.mulf %547, %546 : vector<8x256xf32>
    %549 = math.sqrt %548 : vector<8x256xf32>
    %cst_198 = arith.constant -0.0077848942 : f32
    %550 = vector.broadcast %cst_198 : f32 to vector<8x256xf32>
    %551 = arith.mulf %550, %549 : vector<8x256xf32>
    %cst_199 = arith.constant -0.322396457 : f32
    %552 = vector.broadcast %cst_199 : f32 to vector<8x256xf32>
    %553 = arith.addf %551, %552 : vector<8x256xf32>
    %554 = arith.mulf %553, %549 : vector<8x256xf32>
    %cst_200 = arith.constant -2.40075827 : f32
    %555 = vector.broadcast %cst_200 : f32 to vector<8x256xf32>
    %556 = arith.addf %554, %555 : vector<8x256xf32>
    %557 = arith.mulf %556, %549 : vector<8x256xf32>
    %cst_201 = arith.constant -2.54973245 : f32
    %558 = vector.broadcast %cst_201 : f32 to vector<8x256xf32>
    %559 = arith.addf %557, %558 : vector<8x256xf32>
    %560 = arith.mulf %559, %549 : vector<8x256xf32>
    %cst_202 = arith.constant 4.37466431 : f32
    %561 = vector.broadcast %cst_202 : f32 to vector<8x256xf32>
    %562 = arith.addf %560, %561 : vector<8x256xf32>
    %563 = arith.mulf %562, %549 : vector<8x256xf32>
    %cst_203 = arith.constant 2.938164 : f32
    %564 = vector.broadcast %cst_203 : f32 to vector<8x256xf32>
    %565 = arith.addf %563, %564 : vector<8x256xf32>
    %cst_204 = arith.constant 0.00778469583 : f32
    %566 = vector.broadcast %cst_204 : f32 to vector<8x256xf32>
    %567 = arith.mulf %566, %549 : vector<8x256xf32>
    %cst_205 = arith.constant 0.322467119 : f32
    %568 = vector.broadcast %cst_205 : f32 to vector<8x256xf32>
    %569 = arith.addf %567, %568 : vector<8x256xf32>
    %570 = arith.mulf %569, %549 : vector<8x256xf32>
    %cst_206 = arith.constant 2.44513416 : f32
    %571 = vector.broadcast %cst_206 : f32 to vector<8x256xf32>
    %572 = arith.addf %570, %571 : vector<8x256xf32>
    %573 = arith.mulf %572, %549 : vector<8x256xf32>
    %cst_207 = arith.constant 3.7544086 : f32
    %574 = vector.broadcast %cst_207 : f32 to vector<8x256xf32>
    %575 = arith.addf %573, %574 : vector<8x256xf32>
    %576 = arith.mulf %575, %549 : vector<8x256xf32>
    %cst_208 = arith.constant 1.000000e+00 : f32
    %577 = vector.broadcast %cst_208 : f32 to vector<8x256xf32>
    %578 = arith.addf %576, %577 : vector<8x256xf32>
    %cst_209 = arith.constant 0.000000e+00 : f32
    %579 = vector.broadcast %cst_209 : f32 to vector<8x256xf32>
    %580 = arith.subf %579, %565 : vector<8x256xf32>
    %581 = arith.divf %580, %578 : vector<8x256xf32>
    %cst_210 = arith.constant 2.425000e-02 : f32
    %582 = vector.broadcast %cst_210 : f32 to vector<8x256xf32>
    %583 = arith.cmpf olt, %472, %582 : vector<8x256xf32>
    %cst_211 = arith.constant 9.757500e-01 : f32
    %584 = vector.broadcast %cst_211 : f32 to vector<8x256xf32>
    %585 = arith.cmpf ogt, %472, %584 : vector<8x256xf32>
    %586 = arith.select %585, %581, %509 : vector<8x256xi1>, vector<8x256xf32>
    %587 = arith.select %583, %543, %586 : vector<8x256xi1>, vector<8x256xf32>
    %c0_212 = arith.constant 0 : index
    %c0_213 = arith.constant 0 : index
    %588 = vector.load %arg5[%c0_212, %c0_213] : memref<8x256xf32, #tpu.memory_space<vmem>>, vector<8x256xf32>
    %cst_214 = arith.constant 0.00999999977 : f32
    %589 = vector.broadcast %cst_214 : f32 to vector<8x256xf32>
    %590 = arith.mulf %589, %587 : vector<8x256xf32>
    %591 = arith.addf %588, %590 : vector<8x256xf32>
    %c0_215 = arith.constant 0 : index
    %c0_216 = arith.constant 0 : index
    %592 = vector.load %arg9[%c0_215, %c0_216] : memref<8x256xf32, #tpu.memory_space<vmem>>, vector<8x256xf32>
    tpu.vector_store %arg9[%c0_215, %c0_216], %591 {strides = array<i32>} : memref<8x256xf32, #tpu.memory_space<vmem>>, vector<8x256xf32>,
    return
  }
  func.func @transform_0(%arg0: i32, %arg1: memref<1xi32, #tpu.memory_space<smem>>) -> (i32, i32) {
    %c0_i32 = arith.constant 0 : i32
    %c0_i32_0 = arith.constant 0 : i32
    return %arg0, %c0_i32 : i32, i32
  }
  func.func @transform_1(%arg0: i32, %arg1: memref<1xi32, #tpu.memory_space<smem>>) -> (i32, i32) {
    %c0_i32 = arith.constant 0 : i32
    %c0_i32_0 = arith.constant 0 : i32
    return %arg0, %c0_i32 : i32, i32
  }
  func.func @transform_2(%arg0: i32, %arg1: memref<1xi32, #tpu.memory_space<smem>>) -> (i32, i32) {
    %c0_i32 = arith.constant 0 : i32
    %c0_i32_0 = arith.constant 0 : i32
    return %arg0, %c0_i32 : i32, i32
  }
  func.func @transform_3(%arg0: i32, %arg1: memref<1xi32, #tpu.memory_space<smem>>) -> (i32, i32) {
    %c0_i32 = arith.constant 0 : i32
    %c0_i32_0 = arith.constant 0 : i32
    return %arg0, %c0_i32 : i32, i32
  }
  func.func @transform_4(%arg0: i32, %arg1: memref<1xi32, #tpu.memory_space<smem>>) -> (i32, i32) {
    %c0_i32 = arith.constant 0 : i32
    %c0_i32_0 = arith.constant 0 : i32
    return %arg0, %c0_i32 : i32, i32
  }
  func.func @transform_5(%arg0: i32, %arg1: memref<1xi32, #tpu.memory_space<smem>>) -> (i32, i32) {
    %c0_i32 = arith.constant 0 : i32
    %c0_i32_0 = arith.constant 0 : i32
    return %arg0, %c0_i32 : i32, i32
  }
  func.func @transform_6(%arg0: i32, %arg1: memref<1xi32, #tpu.memory_space<smem>>) -> (i32, i32) {
    %c0_i32 = arith.constant 0 : i32
    %c0_i32_0 = arith.constant 0 : i32
    return %arg0, %c0_i32 : i32, i32
  }
  func.func @transform_7(%arg0: i32, %arg1: memref<1xi32, #tpu.memory_space<smem>>) -> (i32, i32) {
    %c0_i32 = arith.constant 0 : i32
    %c0_i32_0 = arith.constant 0 : i32
    return %arg0, %c0_i32 : i32, i32
  }
}

</mosaic_0001>

<bundles_post_ra>
// kernel: tpu_custom_call.1
= control target key start
LH: loop header
LB: loop body
LE: loop exit
PB: predicated region body
PF: predicated region fallthrough
CT: control target
= control target key end

     0   :  { %15 = vsyncpa [#allocation5], 0  ;;  %s2098_s0 = inlined_call_operand.<no memory space> [shape: s32[1], index: 0, kind: input, shape index: {}]   ;;  %s2099_s1 = inlined_call_operand.hbm [shape: f32[8,256], index: 1, kind: input, shape index: {}]   ;;  %s2100_s2 = inlined_call_operand.hbm [shape: f32[8,256], index: 2, kind: input, shape index: {}]   ;;  %s2101_s3 = inlined_call_operand.hbm [shape: f32[8,256], index: 3, kind: input, shape index: {}]   ;;  %s2102_s4 = inlined_call_operand.hbm [shape: f32[8,256], index: 4, kind: input, shape index: {}]   ;;  %s2103_s5 = inlined_call_operand.hbm [shape: f32[8,256], index: 5, kind: output, shape index: {0}]   ;;  %s2104_s6 = inlined_call_operand.hbm [shape: f32[8,256], index: 6, kind: output, shape index: {1}]   ;;  %s2105_s7 = inlined_call_operand.hbm [shape: f32[8,256], index: 7, kind: output, shape index: {2}]   ;;  %s2106_s8 = inlined_call_operand.hbm [shape: f32[8,256], index: 8, kind: output, shape index: {3}]  }
   0x1   :  { %16 = vsyncpa [#allocation8], 0 }
   0x2   :  { %17 = vsyncpa [#allocation11], 0 }
   0x3   :  { %18 = vsyncpa [#allocation6], 0 }
   0x4   :  { %19 = vsyncpa [#allocation14], 0 }
   0x5   :  { %20 = vsyncpa [#allocation17], 0  ;;  %s1340_s27 = smov [#allocation7]   ;;  %s1341_s29 = smov [#allocation4]  }
   0x6   :  { %s37_s28 = sshll.u32 %s1340_s27, 4  ;;  %s27_s30 = sshll.u32 %s1341_s29, 4  ;;  %s38_s28 = int_to_ptr.vmem [resolvable:$true] %s37_s28  ;;  %s28_s30 = int_to_ptr.vmem [resolvable:$true] %s27_s30 }
   0x7   :  { %s1152_s11 = scalar_lea.hbm %s2100_s2, 256 }
   0x8   :  { %p1153_p0 = scmp.ne.s32.totalorder %s2100_s2, %s1152_s11  ;;  %p1156_p1 = scmp.lt.u32.totalorder %s1152_s11, %s2100_s2 }
   0xa   :  { %p1158_p2 = pnand %p1156_p1, %p1153_p0 }
   0xc   :  { %1161 = shalt.err (!%p1158_p2)
}
   0xd   :  { %s1162_s16 = scalar_lea.vmem %s38_s28, 256  ;;  %p1167_p4 = scmp.lt.s32.totalorder %s38_s28, %s38_s28 }
   0xe   :  { %p1163_p3 = scmp.ne.s32.totalorder %s38_s28, %s1162_s16  ;;  %p1168_p5 = scmp.lt.s32.totalorder %s1162_s16, %s1162_s16 }
  0x10   :  { %p1169_p6 = por %p1168_p5, %p1167_p4 }
  0x12   :  { %p1170_p7 = pnand %p1169_p6, %p1163_p3 }
  0x14   :  { %1173 = shalt.err (!%p1170_p7)
}
  0x15   :  { %40 = dma.hbm_to_vmem [thread:$0]  %s2100_s2, 256, %s38_s28, [#allocation8]  }
  0x16   :  { %s1174_s21 = scalar_lea.hbm %s2099_s1, 256 }
  0x17   :  { %p1175_p8 = scmp.ne.s32.totalorder %s2099_s1, %s1174_s21  ;;  %p1178_p9 = scmp.lt.u32.totalorder %s1174_s21, %s2099_s1 }
  0x19   :  { %p1180_p10 = pnand %p1178_p9, %p1175_p8 }
  0x1b   :  { %1183 = shalt.err (!%p1180_p10)
}
  0x1c   :  { %s1184_s26 = scalar_lea.vmem %s28_s30, 256  ;;  %p1189_p12 = scmp.lt.s32.totalorder %s28_s30, %s28_s30 }
  0x1d   :  { %p1185_p11 = scmp.ne.s32.totalorder %s28_s30, %s1184_s26  ;;  %p1190_p13 = scmp.lt.s32.totalorder %s1184_s26, %s1184_s26 }
  0x1f   :  { %p1191_p0 = por %p1190_p13, %p1189_p12 }
  0x21   :  { %p1192_p1 = pnand %p1191_p0, %p1185_p11 }
  0x23   :  { %1195 = shalt.err (!%p1192_p1)
}
  0x24   :  { %30 = dma.hbm_to_vmem [thread:$0]  %s2099_s1, 256, %s28_s30, [#allocation5]  }
  0x25   :  { %s1342_s28 = smov [#allocation9]   ;;  %s1343_s9 = smov [#allocation10]  }
  0x26   :  { %s47_s29 = sshll.u32 %s1342_s28, 4  ;;  %s57_s10 = sshll.u32 %s1343_s9, 4  ;;  %s48_s29 = int_to_ptr.vmem [resolvable:$true] %s47_s29  ;;  %s58_s10 = int_to_ptr.vmem [resolvable:$true] %s57_s10 }
  0x27   :  { %s1196_s13 = scalar_lea.hbm %s2101_s3, 256 }
  0x28   :  { %p1197_p2 = scmp.ne.s32.totalorder %s2101_s3, %s1196_s13  ;;  %p1200_p3 = scmp.lt.u32.totalorder %s1196_s13, %s2101_s3 }
  0x2a   :  { %p1202_p4 = pnand %p1200_p3, %p1197_p2 }
  0x2c   :  { %1205 = shalt.err (!%p1202_p4)
}
  0x2d   :  { %s1206_s1 = scalar_lea.vmem %s48_s29, 256  ;;  %p1211_p6 = scmp.lt.s32.totalorder %s48_s29, %s48_s29 }
  0x2e   :  { %p1207_p5 = scmp.ne.s32.totalorder %s48_s29, %s1206_s1  ;;  %p1212_p7 = scmp.lt.s32.totalorder %s1206_s1, %s1206_s1 }
  0x30   :  { %p1213_p8 = por %p1212_p7, %p1211_p6 }
  0x32   :  { %p1214_p9 = pnand %p1213_p8, %p1207_p5 }
  0x34   :  { %1217 = shalt.err (!%p1214_p9)
}
  0x35   :  { %50 = dma.hbm_to_vmem [thread:$0]  %s2101_s3, 256, %s48_s29, [#allocation8]  }
  0x36   :  { %s1218_s21 = scalar_lea.hbm %s2102_s4, 256 }
  0x37   :  { %p1219_p10 = scmp.ne.s32.totalorder %s2102_s4, %s1218_s21  ;;  %p1222_p11 = scmp.lt.u32.totalorder %s1218_s21, %s2102_s4 }
  0x39   :  { %p1224_p12 = pnand %p1222_p11, %p1219_p10 }
  0x3b   :  { %1227 = shalt.err (!%p1224_p12)
}
  0x3c   :  { %s1228_s26 = scalar_lea.vmem %s58_s10, 256  ;;  %p1233_p0 = scmp.lt.s32.totalorder %s58_s10, %s58_s10 }
  0x3d   :  { %p1229_p13 = scmp.ne.s32.totalorder %s58_s10, %s1228_s26  ;;  %p1234_p1 = scmp.lt.s32.totalorder %s1228_s26, %s1228_s26 }
  0x3f   :  { %p1235_p2 = por %p1234_p1, %p1233_p0 }
  0x41   :  { %p1236_p3 = pnand %p1235_p2, %p1229_p13 }
  0x43   :  { %1239 = shalt.err (!%p1236_p3)
}
  0x44   :  { %60 = dma.hbm_to_vmem [thread:$0]  %s2102_s4, 256, %s58_s10, [#allocation11]  }
  0x45   :  { %1328 = dma.done.wait [#allocation5], 256  }
  0x46   :  { %1329 = vsyncadd [#allocation5], 4294967040 }
  0x47   :  { %1330 = dma.done.wait [#allocation8], 512  }
  0x48   :  { %1331 = vsyncadd [#allocation8], 4294966784 }
  0x49   :  { %1332 = dma.done.wait [#allocation11], 256  }
  0x4a   :  { %1333 = vsyncadd [#allocation11], 4294967040  ;;  %v74_v0 = vlaneseq  ;;  %s85_s29 = smul.u32 2654435769, %s2098_s0  ;;  %s1344_s0 = smov [#allocation13]  }
  0x4b   :  { %s982_s4 = sshll.u32 %s1344_s0, 4  ;;  %s983_s4 = int_to_ptr.vmem [resolvable:$true] %s982_s4 }
  0x4c   :  { %v75_v1 = vshrl.u32 %v74_v0, 7  ;;  %v77_v2 = vand.u32 127, %v74_v0  ;;  %s306_s9 = sadd.s32 198677718, %s85_s29  ;;  %s86_s11 = sadd.s32 2246822507, %s85_s29 }
  0x4d   :  { %s526_s12 = sadd.s32 2445500225, %s85_s29  ;;  %s746_s13 = sadd.s32 397355436, %s85_s29  ;;  %v307_v5 = vstv %s306_s9  ;;  %v87_v6 = vstv %s86_s11 }
  0x4e   :  { %v80_v3 = vmul.u32 256, %v75_v1  ;;  %v78_v4 = vadd.s32 128, %v77_v2  ;;  %v527_v9 = vstv %s526_s12  ;;  %v747_v10 = vstv %s746_s13  ;;  %s1240_s10 = scalar_lea.vmem %s983_s4, 256  ;;  %p1245_p5 = scmp.lt.s32.totalorder %s983_s4, %s983_s4 }
  0x4f   :  { %p1241_p4 = scmp.ne.s32.totalorder %s983_s4, %s1240_s10  ;;  %p1246_p6 = scmp.lt.s32.totalorder %s1240_s10, %s1240_s10 }
  0x50   :  { %v83_v7 = vadd.s32 %v80_v3, %v77_v2  ;;  %v84_v8 = vadd.s32 %v80_v3, %v78_v4 }
  0x51   :  { %p1247_p7 = por %p1246_p6, %p1245_p5 }
  0x52   :  { %v308_v11 = vxor.u32 %v307_v5, %v83_v7  ;;  %v309_v12 = vxor.u32 %v307_v5, %v84_v8  ;;  %v88_v13 = vxor.u32 %v87_v6, %v83_v7  ;;  %v89_v14 = vxor.u32 %v87_v6, %v84_v8 }
  0x53   :  { %v528_v15 = vxor.u32 %v527_v9, %v83_v7  ;;  %v529_v16 = vxor.u32 %v527_v9, %v84_v8  ;;  %v748_v17 = vxor.u32 %v747_v10, %v83_v7  ;;  %v749_v18 = vxor.u32 %v747_v10, %v84_v8  ;;  %p1248_p8 = pnand %p1247_p7, %p1241_p4 }
  0x54   :  { %v310_v19 = vmul.u32 3432918353, %v308_v11  ;;  %v311_v20 = vmul.u32 3432918353, %v309_v12 }
  0x55   :  { %v90_v21 = vmul.u32 3432918353, %v88_v13  ;;  %v91_v22 = vmul.u32 3432918353, %v89_v14 }
  0x56   :  { %v312_v23 = vshrl.u32 %v310_v19, 16  ;;  %v313_v24 = vshrl.u32 %v311_v20, 16  ;;  %v530_v25 = vmul.u32 3432918353, %v528_v15  ;;  %v531_v30 = vmul.u32 3432918353, %v529_v16 }
  0x57   :  { %v92_v26 = vshrl.u32 %v90_v21, 16  ;;  %v93_v27 = vshrl.u32 %v91_v22, 16  ;;  %v750_v58 = vmul.u32 3432918353, %v748_v17  ;;  %v751_v0 = vmul.u32 3432918353, %v749_v18 }
  0x58   :  { %v314_v28 = vxor.u32 %v312_v23, %v310_v19  ;;  %v315_v29 = vxor.u32 %v313_v24, %v311_v20  ;;  %v532_v35 = vshrl.u32 %v530_v25, 16  ;;  %v533_v40 = vshrl.u32 %v531_v30, 16 }
  0x59   :  { %v94_v31 = vxor.u32 %v92_v26, %v90_v21  ;;  %v95_v32 = vxor.u32 %v93_v27, %v91_v22  ;;  %v752_v5 = vshrl.u32 %v750_v58, 16  ;;  %v753_v10 = vshrl.u32 %v751_v0, 16 }
  0x5a   :  { %v316_v33 = vmul.u32 2246822507, %v314_v28  ;;  %v317_v34 = vmul.u32 2246822507, %v315_v29  ;;  %v534_v45 = vxor.u32 %v532_v35, %v530_v25  ;;  %v535_v50 = vxor.u32 %v533_v40, %v531_v30 }
  0x5b   :  { %v96_v36 = vmul.u32 2246822507, %v94_v31  ;;  %v97_v37 = vmul.u32 2246822507, %v95_v32  ;;  %v754_v15 = vxor.u32 %v752_v5, %v750_v58  ;;  %v755_v20 = vxor.u32 %v753_v10, %v751_v0 }
  0x5c   :  { %v318_v38 = vshrl.u32 %v316_v33, 13  ;;  %v319_v39 = vshrl.u32 %v317_v34, 13  ;;  %v536_v55 = vmul.u32 2246822507, %v534_v45  ;;  %v537_v61 = vmul.u32 2246822507, %v535_v50 }
  0x5d   :  { %v98_v41 = vshrl.u32 %v96_v36, 13  ;;  %v99_v42 = vshrl.u32 %v97_v37, 13  ;;  %v756_v26 = vmul.u32 2246822507, %v754_v15  ;;  %v757_v32 = vmul.u32 2246822507, %v755_v20 }
  0x5e   :  { %v320_v43 = vxor.u32 %v318_v38, %v316_v33  ;;  %v321_v44 = vxor.u32 %v319_v39, %v317_v34  ;;  %v538_v3 = vshrl.u32 %v536_v55, 13  ;;  %v539_v9 = vshrl.u32 %v537_v61, 13 }
  0x5f   :  { %v100_v46 = vxor.u32 %v98_v41, %v96_v36  ;;  %v101_v47 = vxor.u32 %v99_v42, %v97_v37  ;;  %v758_v39 = vshrl.u32 %v756_v26, 13 }
  0x60   :  { %v322_v48 = vmul.u32 3266489909, %v320_v43  ;;  %v323_v49 = vmul.u32 3266489909, %v321_v44  ;;  %v540_v13 = vxor.u32 %v538_v3, %v536_v55  ;;  %v541_v19 = vxor.u32 %v539_v9, %v537_v61 }
  0x61   :  { %v102_v51 = vmul.u32 3266489909, %v100_v46  ;;  %v103_v52 = vmul.u32 3266489909, %v101_v47  ;;  %v1484_v58 = vxor.u32 %v758_v39, %v756_v26 }
  0x62   :  { %v324_v53 = vshrl.u32 %v322_v48, 16  ;;  %v325_v54 = vshrl.u32 %v323_v49, 16  ;;  %v542_v23 = vmul.u32 3266489909, %v540_v13  ;;  %v543_v29 = vmul.u32 3266489909, %v541_v19 }
  0x63   :  { %v104_v56 = vshrl.u32 %v102_v51, 16  ;;  %v105_v57 = vshrl.u32 %v103_v52, 16 }
  0x64   :  { %v326_v59 = vxor.u32 %v324_v53, %v322_v48  ;;  %v327_v60 = vxor.u32 %v325_v54, %v323_v49  ;;  %v544_v35 = vshrl.u32 %v542_v23, 16  ;;  %v545_v43 = vshrl.u32 %v543_v29, 16 }
  0x65   :  { %v106_v62 = vxor.u32 %v104_v56, %v102_v51  ;;  %v107_v63 = vxor.u32 %v105_v57, %v103_v52  ;;  %v759_v53 = vshrl.u32 %v757_v32, 13 }
  0x66   :  { %v328_v1 = vshrl.u32 %v326_v59, 9  ;;  %v329_v2 = vshrl.u32 %v327_v60, 9  ;;  %v546_v49 = vxor.u32 %v544_v35, %v542_v23  ;;  %v547_v57 = vxor.u32 %v545_v43, %v543_v29 }
  0x67   :  { %v108_v4 = vshrl.u32 %v106_v62, 9  ;;  %v109_v8 = vshrl.u32 %v107_v63, 9  ;;  %v762_v29 = vmul.u32 3266489909, %v1484_v58 }
  0x68   :  { %v330_v6 = vcvt.s32.f32 %v328_v1  ;;  %v331_v7 = vcvt.s32.f32 %v329_v2 }
  0x69   :  { %v110_v14 = vcvt.s32.f32 %v108_v4  ;;  %v111_v17 = vcvt.s32.f32 %v109_v8  ;;  %v548_v4 = vshrl.u32 %v546_v49, 9 }
  0x6a   :  { %v332_v11 = vadd.f32 0.5, %v330_v6  ;;  %v333_v12 = vadd.f32 0.5, %v331_v7 }
  0x6b   :  { %v112_v25 = vadd.f32 0.5, %v110_v14  ;;  %v113_v28 = vadd.f32 0.5, %v111_v17  ;;  %v550_v26 = vcvt.s32.f32 %v548_v4 }
  0x6c   :  { %v1444_v16 = vmul.f32 1.1920929e-07, %v332_v11  ;;  %v1446_v18 = vmul.f32 1.1920929e-07, %v333_v12  ;;  %v1501_v12 = vxor.u32 %v759_v53, %v757_v32 }
  0x6d   :  { %v1470_v38 = vmul.f32 1.1920929e-07, %v112_v25  ;;  %v1472_v42 = vmul.f32 1.1920929e-07, %v113_v28  ;;  %v549_v25 = vshrl.u32 %v547_v57, 9 }
  0x6e   :  { %v1449_v21 = vadd.f32 -0.5, %v1444_v16  ;;  %1040 = vlog2.f32 %v1444_v16  ;;  %v446_v22 = vsub.f32 1.0, %v1444_v16  ;;  %v1454_v24 = vadd.f32 -0.5, %v1446_v18 }
  0x6f   :  { %1042 = vlog2.f32 %v1446_v18  ;;  %v447_v31 = vsub.f32 1.0, %v1446_v18  ;;  %v1475_v46 = vadd.f32 -0.5, %v1470_v38  ;;  %v1482_v52 = vadd.f32 -0.5, %v1472_v42 }
  0x70   :  { %v1459_v27 = vmul.f32 %v1449_v21, %v1449_v21  ;;  %1044 = vlog2.f32 %v446_v22  ;;  %v1463_v30 = vmul.f32 %v1454_v24, %v1454_v24  ;;  %v226_v23 = vsub.f32 1.0, %v1470_v38 }
  0x71   :  { %1046 = vlog2.f32 %v447_v31  ;;  %v1488_v63 = vmul.f32 %v1475_v46, %v1475_v46  ;;  %v1496_v7 = vmul.f32 %v1482_v52, %v1482_v52  ;;  %v763_v31 = vmul.u32 3266489909, %v1501_v12 }
  0x72   :  { %v340_v33 = vmul.f32 -39.69683, %v1459_v27  ;;  %v360_v34 = vmul.f32 -54.476097, %v1459_v27  ;;  %v341_v36 = vmul.f32 -39.69683, %v1463_v30 }
  0x73   :  { %v361_v37 = vmul.f32 -54.476097, %v1463_v30  ;;  %v120_v8 = vmul.f32 -39.69683, %v1488_v63  ;;  %v121_v15 = vmul.f32 -39.69683, %v1496_v7 }
  0x74   :  { %v342_v40 = vadd.f32 220.9461, %v340_v33  ;;  %v362_v41 = vadd.f32 161.58583, %v360_v34  ;;  %v343_v44 = vadd.f32 220.9461, %v341_v36 }
  0x75   :  { %v363_v45 = vadd.f32 161.58583, %v361_v37  ;;  %v122_v28 = vadd.f32 220.9461, %v120_v8  ;;  %v123_v34 = vadd.f32 220.9461, %v121_v15 }
  0x76   :  { %v344_v47 = vmul.f32 %v342_v40, %v1459_v27  ;;  %v364_v48 = vmul.f32 %v362_v41, %v1459_v27  ;;  %v345_v50 = vmul.f32 %v343_v44, %v1463_v30  ;;  %v227_v39 = vsub.f32 1.0, %v1472_v42 }
  0x77   :  { %v365_v51 = vmul.f32 %v363_v45, %v1463_v30  ;;  %v1519_v40 = vcvt.s32.f32 %v549_v25  ;;  %v1521_v41 = vadd.f32 0.5, %v550_v26  ;;  %v124_v44 = vmul.f32 %v122_v28, %v1488_v63 }
  0x78   :  { %v1041_v54 = vpop.eup %1040  ;;  %v346_v55 = vadd.f32 -275.9285, %v344_v47  ;;  %v366_v56 = vadd.f32 -155.69897, %v364_v48  ;;  %v347_v61 = vadd.f32 -275.9285, %v345_v50  ;;  %v125_v50 = vmul.f32 %v123_v34, %v1496_v7 }
  0x79   :  { %v1043_v59 = vpop.eup %1042  ;;  %v387_v60 = vmul.f32 0.6931472, %v1041_v54  ;;  %v367_v62 = vadd.f32 -155.69897, %v365_v51  ;;  %v140_v45 = vmul.f32 -54.476097, %v1488_v63 }
  0x7a   :  { %v1045_v0 = vpop.eup %1044  ;;  %v348_v1 = vmul.f32 %v346_v55, %v1459_v27  ;;  %v368_v2 = vmul.f32 %v366_v56, %v1459_v27  ;;  %v389_v3 = vmul.f32 0.6931472, %v1043_v59  ;;  %v349_v13 = vmul.f32 %v347_v61, %v1463_v30 }
  0x7b   :  { %v1492_v5 = vmul.f32 -2.0, %v387_v60  ;;  %v449_v6 = vmul.f32 0.6931472, %v1045_v0  ;;  %v369_v14 = vmul.f32 %v367_v62, %v1463_v30  ;;  %v1047_v22 = vpop.eup %1046  ;;  %v141_v47 = vmul.f32 -54.476097, %v1496_v7 }
  0x7c   :  { %v350_v9 = vadd.f32 138.35776, %v348_v1  ;;  %v370_v10 = vadd.f32 66.801315, %v368_v2  ;;  %v1499_v11 = vmul.f32 -2.0, %v389_v3 }
  0x7d   :  { %1048 = vrsqrt.f32 %v1492_v5  ;;  %v1509_v20 = vmul.f32 -2.0, %v449_v6  ;;  %v351_v32 = vadd.f32 138.35776, %v349_v13  ;;  %v371_v33 = vadd.f32 66.801315, %v369_v14 }
  0x7e   :  { %v352_v17 = vmul.f32 %v350_v9, %v1459_v27  ;;  %v372_v19 = vmul.f32 %v370_v10, %v1459_v27  ;;  %1050 = vrsqrt.f32 %v1499_v11  ;;  %v451_v37 = vmul.f32 0.6931472, %v1047_v22 }
  0x7f   :  { %1052 = vrsqrt.f32 %v1509_v20  ;;  %vm394_vm0 = vcmp.eq.f32.partialorder %v1492_v5, inf  ;;  %v353_v48 = vmul.f32 %v351_v32, %v1463_v30  ;;  %v373_v49 = vmul.f32 %v371_v33, %v1463_v30 }
  0x80   :  { %1054 = vlog2.f32 %v1470_v38  ;;  %v354_v35 = vadd.f32 -30.664799, %v352_v17  ;;  %v374_v36 = vadd.f32 -13.280682, %v372_v19  ;;  %v1523_v43 = vmul.f32 -2.0, %v451_v37 }
  0x81   :  { %1056 = vlog2.f32 %v1472_v42  ;;  %vm396_vm1 = vcmp.eq.f32.partialorder %v1492_v5, 0.0  ;;  %v397_v54 = vand.u32 2147483648, %v1492_v5  ;;  %vm456_vm2 = vcmp.eq.f32.partialorder %v1509_v20, inf }
  0x82   :  { %1058 = vlog2.f32 %v226_v23  ;;  %v356_v51 = vmul.f32 %v354_v35, %v1459_v27  ;;  %v376_v53 = vmul.f32 %v374_v36, %v1459_v27  ;;  %vm401_vm3 = vcmp.eq.f32.partialorder %v1499_v11, inf }
  0x83   :  { %vm403_vm4 = vcmp.eq.f32.partialorder %v1499_v11, 0.0  ;;  %1060 = vrsqrt.f32 %v1523_v43  ;;  %vm458_vm5 = vcmp.eq.f32.partialorder %v1509_v20, 0.0  ;;  %v459_v57 = vand.u32 2147483648, %v1509_v20 }
  0x84   :  { %v404_v27 = vand.u32 2147483648, %v1499_v11  ;;  %v355_v60 = vadd.f32 -30.664799, %v353_v48  ;;  %v375_v61 = vadd.f32 -13.280682, %v373_v49  ;;  %1062 = vlog2.f32 %v227_v39 }
  0x85   :  { %v1544_v62 = vadd.f32 -275.9285, %v124_v44  ;;  %v1546_v1 = vadd.f32 2.5066283, %v356_v51  ;;  %v1548_v2 = vadd.f32 1.0, %v376_v53  ;;  %vm463_vm6 = vcmp.eq.f32.partialorder %v1523_v43, inf }
  0x86   :  { %v1561_v10 = vadd.f32 -275.9285, %v125_v50  ;;  %v142_v13 = vadd.f32 161.58583, %v140_v45  ;;  %vm465_vm7 = vcmp.eq.f32.partialorder %v1523_v43, 0.0  ;;  %v466_v25 = vand.u32 2147483648, %v1523_v43 }
  0x87   :  { %v1049_v55 = vpop.eup %1048  ;;  %v143_v45 = vadd.f32 161.58583, %v141_v47  ;;  %v377_v50 = vmul.f32 %v375_v61, %v1463_v30  ;;  %1064 = vrcp.f32 %v1548_v2  ;;  %vm512_vm8 = vcmp.gt.f32.partialorder %v1444_v16, 0.97575 }
  0x88   :  { %v393_v56 = vmul.f32 %v1049_v55, %v1492_v5  ;;  %v1051_v59 = vpop.eup %1050  ;;  %vm510_vm9 = vcmp.lt.f32.partialorder %v1444_v16, 0.02425  ;;  %vm511_vm10 = vcmp.lt.f32.partialorder %v1446_v18, 0.02425  ;;  %vm513_vm11 = vcmp.gt.f32.partialorder %v1446_v18, 0.97575 }
  0x89   :  { %v1053_v0 = vpop.eup %1052  ;;  %v400_v4 = vmul.f32 %v1051_v59, %v1499_v11 }
  0x8a   :  { %v395_v3 = vsel %vm394_vm0, %v1492_v5, %v393_v56  ;;  %v1554_v6 = vpop.eup %1054  ;;  %v455_v9 = vmul.f32 %v1053_v0, %v1509_v20 }
  0x8b   :  { %v1558_v8 = vsel %vm396_vm1, %v397_v54, %v395_v3  ;;  %v1563_v14 = vpop.eup %1056  ;;  %v402_v19 = vsel %vm401_vm3, %v1499_v11, %v400_v4  ;;  %v1590_v11 = vmul.f32 %v355_v60, %v1463_v30  ;;  %v144_v60 = vmul.f32 %v142_v13, %v1488_v63 }
  0x8c   :  { %v406_v15 = vmul.f32 -0.007784894, %v1558_v8  ;;  %v426_v17 = vmul.f32 0.007784696, %v1558_v8  ;;  %v1571_v5 = vpop.eup %1058  ;;  %v457_v22 = vsel %vm456_vm2, %v1509_v20, %v455_v9  ;;  %v1578_v23 = vsel %vm403_vm4, %v404_v27, %v402_v19 }
  0x8d   :  { %v1584_v32 = vsel %vm458_vm5, %v459_v57, %v457_v22  ;;  %v407_v33 = vmul.f32 -0.007784894, %v1578_v23  ;;  %v427_v36 = vmul.f32 0.007784696, %v1578_v23  ;;  %v1061_v20 = vpop.eup %1060  ;;  %v145_v3 = vmul.f32 %v143_v45, %v1496_v7 }
  0x8e   :  { %v408_v26 = vadd.f32 -0.32239646, %v406_v15  ;;  %v428_v28 = vadd.f32 0.32246712, %v426_v17  ;;  %v468_v34 = vmul.f32 -0.007784894, %v1584_v32  ;;  %v462_v56 = vmul.f32 %v1061_v20, %v1523_v43  ;;  %v1598_v57 = vpop.eup %1062 }
  0x8f   :  { %v488_v35 = vmul.f32 0.007784696, %v1584_v32  ;;  %v409_v44 = vadd.f32 -0.32239646, %v407_v33  ;;  %v429_v51 = vadd.f32 0.32246712, %v427_v36 }
  0x90   :  { %v410_v37 = vmul.f32 %v408_v26, %v1558_v8  ;;  %v430_v39 = vmul.f32 %v428_v28, %v1558_v8  ;;  %v470_v48 = vadd.f32 -0.32239646, %v468_v34  ;;  %v464_v17 = vsel %vm463_vm6, %v1523_v43, %v462_v56 }
  0x91   :  { %v490_v49 = vadd.f32 0.32246712, %v488_v35  ;;  %v411_v55 = vmul.f32 %v409_v44, %v1578_v23  ;;  %v431_v47 = vmul.f32 %v429_v51, %v1578_v23  ;;  %v1613_v13 = vsel %vm465_vm7, %v466_v25, %v464_v17 }
  0x92   :  { %v412_v53 = vadd.f32 -2.4007583, %v410_v37  ;;  %v432_v54 = vadd.f32 2.4451342, %v430_v39  ;;  %v472_v27 = vmul.f32 %v470_v48, %v1584_v32  ;;  %v469_v35 = vmul.f32 -0.007784894, %v1613_v13 }
  0x93   :  { %v492_v59 = vmul.f32 %v490_v49, %v1584_v32  ;;  %v413_v61 = vadd.f32 -2.4007583, %v411_v55  ;;  %v433_v15 = vadd.f32 2.4451342, %v431_v47  ;;  %v489_v39 = vmul.f32 0.007784696, %v1613_v13 }
  0x94   :  { %v414_v0 = vmul.f32 %v412_v53, %v1558_v8  ;;  %v434_v30 = vmul.f32 %v432_v54, %v1558_v8  ;;  %v474_v4 = vadd.f32 -2.4007583, %v472_v27  ;;  %v146_v44 = vadd.f32 -155.69897, %v144_v60 }
  0x95   :  { %v494_v9 = vadd.f32 2.4451342, %v492_v59  ;;  %v415_v26 = vmul.f32 %v413_v61, %v1578_v23  ;;  %v435_v34 = vmul.f32 %v433_v15, %v1578_v23  ;;  %v128_v25 = vmul.f32 %v1544_v62, %v1488_v63 }
  0x96   :  { %v416_v19 = vadd.f32 -2.5497324, %v414_v0  ;;  %v436_v22 = vadd.f32 3.7544086, %v434_v30  ;;  %v476_v28 = vmul.f32 %v474_v4, %v1584_v32  ;;  %v471_v49 = vadd.f32 -0.32239646, %v469_v35 }
  0x97   :  { %v496_v33 = vmul.f32 %v494_v9, %v1584_v32  ;;  %v437_v43 = vadd.f32 3.7544086, %v435_v34  ;;  %v147_v51 = vadd.f32 -155.69897, %v145_v3  ;;  %v417_v55 = vadd.f32 -2.5497324, %v415_v26 }
  0x98   :  { %v418_v36 = vmul.f32 %v416_v19, %v1558_v8  ;;  %v438_v37 = vmul.f32 %v436_v22, %v1558_v8  ;;  %v478_v45 = vadd.f32 -2.5497324, %v476_v28  ;;  %v491_v56 = vadd.f32 0.32246712, %v489_v39 }
  0x99   :  { %v498_v20 = vadd.f32 3.7544086, %v496_v33  ;;  %v473_v59 = vmul.f32 %v471_v49, %v1613_v13  ;;  %v148_v47 = vmul.f32 %v146_v44, %v1488_v63  ;;  %v439_v62 = vmul.f32 %v437_v43, %v1578_v23 }
  0x9a   :  { %v440_v48 = vadd.f32 1.0, %v438_v37  ;;  %v480_v53 = vmul.f32 %v478_v45, %v1584_v32  ;;  %v420_v27 = vadd.f32 4.3746643, %v418_v36  ;;  %v493_v2 = vmul.f32 %v491_v56, %v1613_v13 }
  0x9b   :  { %v500_v54 = vmul.f32 %v498_v20, %v1584_v32  ;;  %v380_v30 = vmul.f32 %v1449_v21, %v1546_v1  ;;  %v379_v61 = vadd.f32 1.0, %v377_v50  ;;  %v475_v3 = vadd.f32 -2.4007583, %v473_v59 }
  0x9c   :  { %1066 = vrcp.f32 %v440_v48  ;;  %v482_v60 = vadd.f32 4.3746643, %v480_v53  ;;  %v129_v4 = vmul.f32 %v1561_v10, %v1496_v7  ;;  %v495_v15 = vadd.f32 2.4451342, %v493_v2 }
  0x9d   :  { %v502_v0 = vadd.f32 1.0, %v500_v54  ;;  %v167_v17 = vmul.f32 0.6931472, %v1554_v6  ;;  %v419_v19 = vmul.f32 %v417_v55, %v1578_v23  ;;  %v477_v22 = vmul.f32 %v475_v3, %v1613_v13 }
  0x9e   :  { %v484_v9 = vmul.f32 %v482_v60, %v1584_v32  ;;  %v130_v26 = vadd.f32 138.35776, %v128_v25  ;;  %v149_v28 = vmul.f32 %v147_v51, %v1496_v7  ;;  %v422_v21 = vmul.f32 %v420_v27, %v1558_v8  ;;  %v1065_v8 = vpop.eup %1064 }
  0x9f   :  { %1068 = vrcp.f32 %v502_v0  ;;  %v441_v1 = vadd.f32 1.0, %v439_v62  ;;  %v497_v10 = vmul.f32 %v495_v15, %v1613_v13  ;;  %v150_v50 = vadd.f32 66.801315, %v148_v47 }
  0xa0   :  { %v486_v32 = vadd.f32 2.938164, %v484_v9  ;;  %1070 = vrcp.f32 %v379_v61  ;;  %v479_v6 = vadd.f32 -2.5497324, %v477_v22  ;;  %v169_v33 = vmul.f32 0.6931472, %v1563_v14 }
  0xa1   :  { %v499_v34 = vadd.f32 3.7544086, %v497_v10  ;;  %v151_v35 = vadd.f32 66.801315, %v149_v28  ;;  %v152_v36 = vmul.f32 %v150_v50, %v1488_v63  ;;  %v1646_v37 = vmul.f32 -2.0, %v167_v17 }
  0xa2   :  { %v481_v39 = vmul.f32 %v479_v6, %v1613_v13  ;;  %v131_v44 = vadd.f32 138.35776, %v129_v4  ;;  %v132_v45 = vmul.f32 %v130_v26, %v1488_v63  ;;  %v1650_v20 = vmul.f32 -2.0, %v169_v33 }
  0xa3   :  { %v424_v43 = vadd.f32 2.938164, %v422_v21  ;;  %v421_v25 = vadd.f32 4.3746643, %v419_v19  ;;  %v501_v48 = vmul.f32 %v499_v34, %v1613_v13  ;;  %1072 = vrsqrt.f32 %v1646_v37 }
  0xa4   :  { %v504_v49 = vsub.f32 0.0, %v486_v32  ;;  %1074 = vrcp.f32 %v441_v1  ;;  %v483_v51 = vadd.f32 4.3746643, %v481_v39  ;;  %v229_v53 = vmul.f32 0.6931472, %v1571_v5 }
  0xa5   :  { %v503_v54 = vadd.f32 1.0, %v501_v48  ;;  %v153_v55 = vmul.f32 %v151_v35, %v1496_v7  ;;  %v154_v56 = vadd.f32 -13.280682, %v152_v36  ;;  %1076 = vrsqrt.f32 %v1650_v20 }
  0xa6   :  { %v1067_v14 = vpop.eup %1066  ;;  %v383_v27 = vmul.f32 %v1065_v8, %v380_v30  ;;  %v359_v59 = vadd.f32 2.5066283, %v1590_v11  ;;  %v485_v47 = vmul.f32 %v483_v51, %v1613_v13  ;;  %v1660_v60 = vmul.f32 1.1920929e-07, %v1521_v41 }
  0xa7   :  { %v443_v62 = vmul.f32 %v1067_v14, %v424_v43  ;;  %1078 = vrcp.f32 %v503_v54  ;;  %v133_v2 = vmul.f32 %v131_v44, %v1496_v7  ;;  %v231_v5 = vmul.f32 0.6931472, %v1598_v57  ;;  %v518_v57 = vld [vmem:[#allocation7] sm:$0xff] }
  0xa8   :  { %v423_v3 = vmul.f32 %v421_v25, %v1578_v23  ;;  %v134_v4 = vadd.f32 -30.664799, %v132_v45  ;;  %v1665_v9 = vmul.f32 -2.0, %v229_v53  ;;  %v155_v30 = vadd.f32 -13.280682, %v153_v55 }
  0xa9   :  { %v1069_v0 = vpop.eup %1068  ;;  %v156_v11 = vmul.f32 %v154_v56, %v1488_v63  ;;  %v1668_v13 = vmul.f32 -2.0, %v231_v5  ;;  %v1671_v41 = vadd.f32 0.5, %v1519_v40  ;;  %v487_v19 = vadd.f32 2.938164, %v485_v47 }
  0xaa   :  { %v507_v61 = vmul.f32 %v1069_v0, %v504_v49  ;;  %v1071_v15 = vpop.eup %1070  ;;  %1080 = vlog2.f32 %v1660_v60  ;;  %v381_v22 = vmul.f32 %v1454_v24, %v359_v59  ;;  %v135_v26 = vadd.f32 -30.664799, %v133_v2  ;;  %v519_v59 = vld [vmem:[#allocation7 + $0x8] sm:$0xff] }
  0xab   :  { %1082 = vrsqrt.f32 %v1665_v9  ;;  %v425_v28 = vadd.f32 2.938164, %v423_v3  ;;  %v136_v21 = vmul.f32 %v134_v4, %v1488_v63  ;;  %v157_v10 = vmul.f32 %v155_v30, %v1496_v7 }
  0xac   :  { %v514_v17 = vsel %vm512_vm8, %v507_v61, %v383_v27  ;;  %1084 = vrsqrt.f32 %v1668_v13  ;;  %v158_v50 = vadd.f32 1.0, %v156_v11  ;;  %vm174_vm12 = vcmp.eq.f32.partialorder %v1646_v37, inf }
  0xad   :  { %v516_v23 = vsel %vm510_vm9, %v443_v62, %v514_v17  ;;  %v1073_v1 = vpop.eup %1072  ;;  %v177_v16 = vand.u32 2147483648, %v1646_v37  ;;  %v505_v24 = vsub.f32 0.0, %v487_v19  ;;  %vm176_vm13 = vcmp.eq.f32.partialorder %v1646_v37, 0.0 }
  0xae   :  { %v520_v40 = vmul.f32 0.01, %v516_v23  ;;  %v1075_v32 = vpop.eup %1074  ;;  %v173_v33 = vmul.f32 %v1073_v1, %v1646_v37  ;;  %v385_v35 = vmul.f32 %v1071_v15, %v381_v22  ;;  %v1690_v63 = vmul.f32 %v135_v26, %v1496_v7 }
  0xaf   :  { %v1077_v34 = vpop.eup %1076  ;;  %vm181_vm14 = vcmp.eq.f32.partialorder %v1650_v20, inf  ;;  %v184_v36 = vand.u32 2147483648, %v1650_v20  ;;  %v1694_v8 = vadd.f32 2.5066283, %v136_v21  ;;  %vm183_vm15 = vcmp.eq.f32.partialorder %v1650_v20, 0.0 }
  0xb0   :  { %v522_v6 = vadd.f32 %v520_v40, %v518_v57  ;;  %v175_v39 = vsel %vm174_vm12, %v1646_v37, %v173_v33  ;;  %v180_v44 = vmul.f32 %v1077_v34, %v1650_v20  ;;  %v445_v43 = vmul.f32 %v1075_v32, %v425_v28 }
  0xb1   :  { %v1079_v45 = vpop.eup %1078  ;;  %v159_v25 = vadd.f32 1.0, %v157_v10  ;;  %1086 = vrcp.f32 %v158_v50  ;;  %v1699_v48 = vsel %vm176_vm13, %v177_v16, %v175_v39  ;;  %vm236_vm0 = vcmp.eq.f32.partialorder %v1665_v9, inf }
  0xb2   :  { %524 = vst [vmem:[#allocation13] sm:$0xff] %v522_v6  ;;  %v509_v7 = vmul.f32 %v1079_v45, %v505_v24  ;;  %v182_v14 = vsel %vm181_vm14, %v1650_v20, %v180_v44  ;;  %v186_v49 = vmul.f32 -0.007784894, %v1699_v48  ;;  %v206_v51 = vmul.f32 0.007784696, %v1699_v48 }
  0xb3   :  { %v1704_v53 = vsel %vm183_vm15, %v184_v36, %v182_v14  ;;  %vm238_vm1 = vcmp.eq.f32.partialorder %v1665_v9, 0.0  ;;  %v239_v37 = vand.u32 2147483648, %v1665_v9  ;;  %vm243_vm2 = vcmp.eq.f32.partialorder %v1668_v13, inf }
  0xb4   :  { %v1081_v54 = vpop.eup %1080  ;;  %v515_v55 = vsel %vm513_vm11, %v509_v7, %v385_v35  ;;  %v187_v56 = vmul.f32 -0.007784894, %v1704_v53  ;;  %v188_v27 = vadd.f32 -0.32239646, %v186_v49  ;;  %v207_v0 = vmul.f32 0.007784696, %v1704_v53 }
  0xb5   :  { %v1083_v20 = vpop.eup %1082  ;;  %v517_v47 = vsel %vm511_vm10, %v445_v43, %v515_v55  ;;  %v208_v62 = vadd.f32 0.32246712, %v206_v51  ;;  %v246_v2 = vand.u32 2147483648, %v1668_v13  ;;  %vm245_vm3 = vcmp.eq.f32.partialorder %v1668_v13, 0.0 }
  0xb6   :  { %v1085_v5 = vpop.eup %1084  ;;  %v521_v61 = vmul.f32 0.01, %v517_v47  ;;  %v189_v3 = vadd.f32 -0.32239646, %v187_v56  ;;  %v190_v4 = vmul.f32 %v188_v27, %v1699_v48  ;;  %v235_v30 = vmul.f32 %v1083_v20, %v1665_v9 }
  0xb7   :  { %v209_v11 = vadd.f32 0.32246712, %v207_v0  ;;  %v210_v15 = vmul.f32 %v208_v62, %v1699_v48  ;;  %v242_v17 = vmul.f32 %v1085_v5, %v1668_v13  ;;  %1088 = vrcp.f32 %v159_v25 }
  0xb8   :  { %v523_v18 = vadd.f32 %v521_v61, %v519_v59  ;;  %v191_v19 = vmul.f32 %v189_v3, %v1704_v53  ;;  %v192_v23 = vadd.f32 -2.4007583, %v190_v4  ;;  %v237_v57 = vsel %vm236_vm0, %v1665_v9, %v235_v30 }
  0xb9   :  { %v211_v22 = vmul.f32 %v209_v11, %v1704_v53  ;;  %v212_v26 = vadd.f32 2.4451342, %v210_v15  ;;  %v1729_v40 = vsel %vm238_vm1, %v239_v37, %v237_v57  ;;  %v244_v28 = vsel %vm243_vm2, %v1668_v13, %v242_v17 }
  0xba   :  { %525 = vst [vmem:[#allocation13 + $0x8] sm:$0xff] %v523_v18  ;;  %v193_v21 = vadd.f32 -2.4007583, %v191_v19  ;;  %v1734_v1 = vsel %vm245_vm3, %v246_v2, %v244_v28  ;;  %v248_v10 = vmul.f32 -0.007784894, %v1729_v40  ;;  %v194_v24 = vmul.f32 %v192_v23, %v1699_v48 }
  0xbb   :  { %v1737_v50 = vpop.eup %1086  ;;  %v213_v16 = vadd.f32 2.4451342, %v211_v22  ;;  %v214_v32 = vmul.f32 %v212_v26, %v1699_v48  ;;  %v249_v9 = vmul.f32 -0.007784894, %v1734_v1  ;;  %v268_v6 = vmul.f32 0.007784696, %v1729_v40 }
  0xbc   :  { %v250_v33 = vadd.f32 -0.32239646, %v248_v10  ;;  %v269_v13 = vmul.f32 0.007784696, %v1734_v1  ;;  %v1745_v34 = vmul.f32 1.1920929e-07, %v1671_v41  ;;  %v195_v45 = vmul.f32 %v193_v21, %v1704_v53 }
  0xbd   :  { %v215_v35 = vmul.f32 %v213_v16, %v1704_v53  ;;  %v216_v36 = vadd.f32 3.7544086, %v214_v32  ;;  %v251_v39 = vadd.f32 -0.32239646, %v249_v9  ;;  %v270_v44 = vadd.f32 0.32246712, %v268_v6 }
  0xbe   :  { %v252_v43 = vmul.f32 %v250_v33, %v1729_v40  ;;  %v271_v25 = vadd.f32 0.32246712, %v269_v13  ;;  %v1751_v7 = vadd.f32 -0.5, %v1660_v60  ;;  %v607_v56 = vmul.f32 0.6931472, %v1081_v54 }
  0xbf   :  { %v217_v14 = vadd.f32 3.7544086, %v215_v35  ;;  %v218_v49 = vmul.f32 %v216_v36, %v1699_v48  ;;  %v253_v51 = vmul.f32 %v251_v39, %v1734_v1  ;;  %v272_v41 = vmul.f32 %v270_v44, %v1729_v40 }
  0xc0   :  { %v254_v37 = vadd.f32 -2.4007583, %v252_v43  ;;  %v273_v55 = vmul.f32 %v271_v25, %v1734_v1  ;;  %1090 = vlog2.f32 %v1745_v34  ;;  %v196_v27 = vadd.f32 -2.5497324, %v194_v24 }
  0xc1   :  { %v219_v20 = vmul.f32 %v217_v14, %v1704_v53  ;;  %v255_v59 = vadd.f32 -2.4007583, %v253_v51  ;;  %v274_v47 = vadd.f32 2.4451342, %v272_v41  ;;  %v197_v0 = vadd.f32 -2.5497324, %v195_v45  ;;  %v1766_v30 = vpop.eup %1088 }
  0xc2   :  { %v256_v62 = vmul.f32 %v254_v37, %v1729_v40  ;;  %v275_v2 = vadd.f32 2.4451342, %v273_v55  ;;  %v666_v5 = vsub.f32 1.0, %v1660_v60  ;;  %v220_v61 = vadd.f32 1.0, %v218_v49 }
  0xc3   :  { %v257_v3 = vmul.f32 %v255_v59, %v1734_v1  ;;  %v276_v4 = vmul.f32 %v274_v47, %v1729_v40  ;;  %v1764_v54 = vadd.f32 -0.5, %v1745_v34  ;;  %v221_v11 = vadd.f32 1.0, %v219_v20 }
  0xc4   :  { %v258_v15 = vadd.f32 -2.5497324, %v256_v62  ;;  %v277_v17 = vmul.f32 %v275_v2, %v1734_v1  ;;  %v1771_v18 = vmul.f32 %v1751_v7, %v1751_v7  ;;  %v198_v19 = vmul.f32 %v196_v27, %v1699_v48 }
  0xc5   :  { %v259_v23 = vadd.f32 -2.5497324, %v257_v3  ;;  %v278_v57 = vadd.f32 3.7544086, %v276_v4  ;;  %v1774_v22 = vmul.f32 -2.0, %v607_v56  ;;  %v199_v26 = vmul.f32 %v197_v0, %v1704_v53 }
  0xc6   :  { %v260_v28 = vmul.f32 %v258_v15, %v1729_v40  ;;  %v279_v21 = vadd.f32 3.7544086, %v277_v17  ;;  %1092 = vlog2.f32 %v666_v5  ;;  %v667_v32 = vsub.f32 1.0, %v1745_v34 }
  0xc7   :  { %1094 = vrcp.f32 %v220_v61  ;;  %v261_v10 = vmul.f32 %v259_v23, %v1734_v1  ;;  %v280_v16 = vmul.f32 %v278_v57, %v1729_v40  ;;  %v1784_v24 = vmul.f32 %v1764_v54, %v1764_v54 }
  0xc8   :  { %1096 = vrcp.f32 %v221_v11  ;;  %v262_v9 = vadd.f32 4.3746643, %v260_v28  ;;  %v281_v6 = vmul.f32 %v279_v21, %v1734_v1  ;;  %v200_v33 = vadd.f32 4.3746643, %v198_v19 }
  0xc9   :  { %v263_v13 = vadd.f32 4.3746643, %v261_v10  ;;  %v282_v35 = vadd.f32 1.0, %v280_v16  ;;  %1098 = vrsqrt.f32 %v1774_v22  ;;  %v201_v39 = vadd.f32 4.3746643, %v199_v26 }
  0xca   :  { %v1091_v36 = vpop.eup %1090  ;;  %v264_v44 = vmul.f32 %v262_v9, %v1729_v40  ;;  %v283_v45 = vadd.f32 1.0, %v281_v6  ;;  %v560_v43 = vmul.f32 -39.69683, %v1771_v18  ;;  %v764_v14 = vshrl.u32 %v762_v29, 16 }
  0xcb   :  { %v265_v25 = vmul.f32 %v263_v13, %v1734_v1  ;;  %1100 = vrcp.f32 %v282_v35 }
  0xcc   :  { %1251 = shalt.err (!%p1248_p8)
}
  0xcd   :  { %s1252_s16 = scalar_lea.hbm %s2104_s6, 256 }
  0xce   :  { %p1253_p9 = scmp.ne.s32.totalorder %s2104_s6, %s1252_s16  ;;  %p1256_p10 = scmp.lt.u32.totalorder %s1252_s16, %s2104_s6 }
  0xd0   :  { %p1258_p11 = pnand %p1256_p10, %p1253_p9 }
  0xd2   :  { %1261 = shalt.err (!%p1258_p11)
}
  0xd3   :  { %985 = dma.vmem_to_hbm [thread:$0]  %s983_s4, 256, %s2104_s6, [#allocation14]   ;;  %1102 = vrcp.f32 %v283_v45  ;;  %v580_v40 = vmul.f32 -54.476097, %v1771_v18  ;;  %v581_v1 = vmul.f32 -54.476097, %v1784_v24  ;;  %v202_v41 = vmul.f32 %v200_v33, %v1699_v48  ;;  %v1093_v0 = vpop.eup %1092 }
  0xd4   :  { %v765_v49 = vshrl.u32 %v763_v31, 16  ;;  %v139_v51 = vadd.f32 2.5066283, %v1690_v63  ;;  %1104 = vlog2.f32 %v667_v32  ;;  %v160_v37 = vmul.f32 %v1475_v46, %v1694_v8  ;;  %v1095_v46 = vpop.eup %1094  ;;  %v299_v45 = vld [vmem:[#allocation4 + $0x8] sm:$0xff]  ;;  %s1345_s6 = smov [#allocation12]  }
  0xd5   :  { %v203_v55 = vmul.f32 %v201_v39, %v1704_v53  ;;  %v266_v56 = vadd.f32 2.938164, %v264_v44  ;;  %v562_v27 = vadd.f32 220.9461, %v560_v43  ;;  %v267_v20 = vadd.f32 2.938164, %v265_v25  ;;  %v1097_v58 = vpop.eup %1096 }
  0xd6   :  { %v609_v59 = vmul.f32 0.6931472, %v1091_v36  ;;  %v1815_v47 = vxor.u32 %v764_v14, %v762_v29  ;;  %vm290_vm4 = vcmp.lt.f32.partialorder %v1470_v38, 0.02425  ;;  %v582_v63 = vadd.f32 161.58583, %v580_v40  ;;  %v1099_v11 = vpop.eup %1098 }
  0xd7   :  { %v583_v62 = vadd.f32 161.58583, %v581_v1  ;;  %v1820_v48 = vxor.u32 %v765_v49, %v763_v31  ;;  %v161_v8 = vmul.f32 %v1482_v52, %v139_v51  ;;  %v204_v53 = vadd.f32 2.938164, %v202_v41  ;;  %v298_v44 = vld [vmem:[#allocation4] sm:$0xff]  ;;  %s972_s21 = sshll.u32 %s1345_s6, 4  ;;  %s973_s21 = int_to_ptr.vmem [resolvable:$true] %s972_s21 }
  0xd8   :  { %v561_v2 = vmul.f32 -39.69683, %v1784_v24  ;;  %v1824_v5 = vmul.f32 -2.0, %v609_v59  ;;  %v163_v29 = vmul.f32 %v1737_v50, %v160_v37  ;;  %v205_v61 = vadd.f32 2.938164, %v203_v55  ;;  %v1101_v50 = vpop.eup %1100  ;;  %s1262_s22 = scalar_lea.vmem %s973_s21, 256  ;;  %p1267_p13 = scmp.lt.s32.totalorder %s973_s21, %s973_s21 }
  0xd9   :  { %v284_v3 = vsub.f32 0.0, %v266_v56  ;;  %v564_v4 = vmul.f32 %v562_v27, %v1771_v18  ;;  %v285_v15 = vsub.f32 0.0, %v267_v20  ;;  %vm614_vm5 = vcmp.eq.f32.partialorder %v1774_v22, inf  ;;  %p1263_p12 = scmp.ne.s32.totalorder %s973_s21, %s1262_s22  ;;  %p1268_p0 = scmp.lt.s32.totalorder %s1262_s22, %s1262_s22 }
  0xda   :  { %v617_v12 = vand.u32 2147483648, %v1774_v22  ;;  %1106 = vrsqrt.f32 %v1824_v5  ;;  %v584_v52 = vmul.f32 %v582_v63, %v1771_v18  ;;  %v585_v31 = vmul.f32 %v583_v62, %v1784_v24 }
  0xdb   :  { %v613_v17 = vmul.f32 %v1099_v11, %v1774_v22  ;;  %vm616_vm6 = vcmp.eq.f32.partialorder %v1774_v22, 0.0  ;;  %v165_v19 = vmul.f32 %v1766_v30, %v161_v8  ;;  %v223_v23 = vmul.f32 %v1095_v46, %v204_v53  ;;  %p1269_p1 = por %p1268_p0, %p1267_p13 }
  0xdc   :  { %vm292_vm7 = vcmp.gt.f32.partialorder %v1470_v38, 0.97575  ;;  %v669_v57 = vmul.f32 0.6931472, %v1093_v0  ;;  %v225_v28 = vmul.f32 %v1097_v58, %v205_v61  ;;  %v287_v21 = vmul.f32 %v1101_v50, %v284_v3 }
  0xdd   :  { %v1103_v26 = vpop.eup %1102  ;;  %vm293_vm8 = vcmp.gt.f32.partialorder %v1472_v42, 0.97575  ;;  %v615_v10 = vsel %vm614_vm5, %v1774_v22, %v613_v17  ;;  %vm291_vm9 = vcmp.lt.f32.partialorder %v1472_v42, 0.02425  ;;  %v563_v9 = vadd.f32 220.9461, %v561_v2  ;;  %p1270_p2 = pnand %p1269_p1, %p1263_p12 }
  0xde   :  { %v1105_v16 = vpop.eup %1104  ;;  %v289_v32 = vmul.f32 %v1103_v26, %v285_v15  ;;  %v1842_v6 = vsel %vm616_vm6, %v617_v12, %v615_v10  ;;  %v294_v30 = vsel %vm292_vm7, %v287_v21, %v163_v29  ;;  %v566_v33 = vadd.f32 -275.9285, %v564_v4 }
  0xdf   :  { %v586_v13 = vadd.f32 -155.69897, %v584_v52  ;;  %v587_v35 = vadd.f32 -155.69897, %v585_v31  ;;  %v296_v39 = vsel %vm290_vm4, %v223_v23, %v294_v30  ;;  %v671_v43 = vmul.f32 0.6931472, %v1105_v16 }
  0xe0   :  { %v295_v36 = vsel %vm293_vm8, %v289_v32, %v165_v19  ;;  %v1846_v25 = vmul.f32 -2.0, %v669_v57  ;;  %v300_v14 = vmul.f32 0.01, %v296_v39  ;;  %v646_v42 = vmul.f32 0.007784696, %v1842_v6 }
  0xe1   :  { %v297_v22 = vsel %vm291_vm9, %v225_v28, %v295_v36  ;;  %v768_v40 = vshrl.u32 %v1815_v47, 9  ;;  %v565_v49 = vmul.f32 %v563_v9, %v1784_v24  ;;  %v626_v51 = vmul.f32 -0.007784894, %v1842_v6 }
  0xe2   :  { %v301_v1 = vmul.f32 0.01, %v297_v22  ;;  %v1852_v38 = vmul.f32 -2.0, %v671_v43  ;;  %v302_v41 = vadd.f32 %v300_v14, %v298_v44  ;;  %v568_v37 = vmul.f32 %v566_v33, %v1771_v18 }
  0xe3   :  { %v588_v55 = vmul.f32 %v586_v13, %v1771_v18  ;;  %v589_v56 = vmul.f32 %v587_v35, %v1784_v24  ;;  %vm621_vm10 = vcmp.eq.f32.partialorder %v1824_v5, inf  ;;  %v624_v59 = vand.u32 2147483648, %v1824_v5 }
  0xe4   :  { %v1107_v27 = vpop.eup %1106  ;;  %v303_v20 = vadd.f32 %v301_v1, %v299_v45  ;;  %1108 = vrsqrt.f32 %v1846_v25  ;;  %304 = vst [vmem:[#allocation12] sm:$0xff] %v302_v41  ;;  %vm623_vm11 = vcmp.eq.f32.partialorder %v1824_v5, 0.0  ;;  %v648_v0 = vadd.f32 0.32246712, %v646_v42 }
  0xe5   :  { %v620_v47 = vmul.f32 %v1107_v27, %v1824_v5  ;;  %1110 = vrsqrt.f32 %v1852_v38  ;;  %v628_v63 = vadd.f32 -0.32239646, %v626_v51  ;;  %v769_v46 = vshrl.u32 %v1820_v48, 9 }
  0xe6   :  { %305 = vst [vmem:[#allocation12 + $0x8] sm:$0xff] %v303_v20  ;;  %v770_v8 = vcvt.s32.f32 %v768_v40 }
  0xe7   :  { %v622_v62 = vsel %vm621_vm10, %v1824_v5, %v620_v47 }
  0xe8   :  { %1273 = shalt.err (!%p1270_p2)
}
  0xe9   :  { %s1274_s25 = scalar_lea.hbm %s2103_s5, 256 }
  0xea   :  { %p1275_p3 = scmp.ne.s32.totalorder %s2103_s5, %s1274_s25  ;;  %p1278_p4 = scmp.lt.u32.totalorder %s1274_s25, %s2103_s5 }
  0xec   :  { %p1280_p5 = pnand %p1278_p4, %p1275_p3 }
  0xee   :  { %1283 = shalt.err (!%p1280_p5)
}
  0xef   :  { %975 = dma.vmem_to_hbm [thread:$0]  %s973_s21, 256, %s2103_s5, [#allocation6]   ;;  %v567_v48 = vadd.f32 -275.9285, %v565_v49  ;;  %v570_v53 = vadd.f32 138.35776, %v568_v37  ;;  %v1879_v58 = vsel %vm623_vm11, %v624_v59, %v622_v62  ;;  %v650_v4 = vmul.f32 %v648_v0, %v1842_v6  ;;  %v1109_v26 = vpop.eup %1108 }
  0xf0   :  { %v590_v2 = vadd.f32 66.801315, %v588_v55  ;;  %v591_v29 = vadd.f32 66.801315, %v589_v56  ;;  %v627_v61 = vmul.f32 -0.007784894, %v1879_v58  ;;  %v630_v11 = vmul.f32 %v628_v63, %v1842_v6  ;;  %v1111_v10 = vpop.eup %1110 }
  0xf1   :  { %v647_v3 = vmul.f32 0.007784696, %v1879_v58  ;;  %v771_v52 = vcvt.s32.f32 %v769_v46  ;;  %v569_v31 = vmul.f32 %v567_v48, %v1784_v24  ;;  %v572_v17 = vmul.f32 %v570_v53, %v1771_v18  ;;  %s1346_s5 = smov [#allocation15]  }
  0xf2   :  { %v629_v15 = vadd.f32 -0.32239646, %v627_v61  ;;  %v592_v5 = vmul.f32 %v590_v2, %v1771_v18  ;;  %v772_v50 = vadd.f32 0.5, %v770_v8  ;;  %v593_v19 = vmul.f32 %v591_v29, %v1784_v24  ;;  %s992_s9 = sshll.u32 %s1346_s5, 4  ;;  %s993_s9 = int_to_ptr.vmem [resolvable:$true] %s992_s9 }
  0xf3   :  { %v649_v12 = vadd.f32 0.32246712, %v647_v3  ;;  %v652_v57 = vadd.f32 2.4451342, %v650_v4  ;;  %vm676_vm12 = vcmp.eq.f32.partialorder %v1846_v25, inf  ;;  %vm678_vm13 = vcmp.eq.f32.partialorder %v1846_v25, 0.0  ;;  %p1289_p7 = scmp.lt.s32.totalorder %s993_s9, %s993_s9 }
  0xf4   :  { %v632_v28 = vadd.f32 -2.4007583, %v630_v11  ;;  %v679_v21 = vand.u32 2147483648, %v1846_v25  ;;  %vm683_vm14 = vcmp.eq.f32.partialorder %v1852_v38, inf  ;;  %v631_v16 = vmul.f32 %v629_v15, %v1879_v58  ;;  %s1284_s11 = scalar_lea.vmem %s993_s9, 256 }
  0xf5   :  { %v651_v23 = vmul.f32 %v649_v12, %v1879_v58  ;;  %v675_v9 = vmul.f32 %v1109_v26, %v1846_v25  ;;  %v686_v30 = vand.u32 2147483648, %v1852_v38  ;;  %v571_v33 = vadd.f32 138.35776, %v569_v31  ;;  %p1285_p6 = scmp.ne.s32.totalorder %s993_s9, %s1284_s11  ;;  %p1290_p8 = scmp.lt.s32.totalorder %s1284_s11, %s1284_s11 }
  0xf6   :  { %v574_v13 = vadd.f32 -30.664799, %v572_v17  ;;  %v682_v35 = vmul.f32 %v1111_v10, %v1852_v38  ;;  %vm685_vm15 = vcmp.eq.f32.partialorder %v1852_v38, 0.0  ;;  %v594_v36 = vadd.f32 -13.280682, %v592_v5 }
  0xf7   :  { %v653_v32 = vadd.f32 2.4451342, %v651_v23  ;;  %v654_v39 = vmul.f32 %v652_v57, %v1842_v6  ;;  %v677_v45 = vsel %vm676_vm12, %v1846_v25, %v675_v9  ;;  %v595_v43 = vadd.f32 -13.280682, %v593_v19  ;;  %p1291_p9 = por %p1290_p8, %p1289_p7 }
  0xf8   :  { %v634_v22 = vmul.f32 %v632_v28, %v1842_v6  ;;  %v1907_v14 = vsel %vm678_vm13, %v679_v21, %v677_v45  ;;  %v684_v42 = vsel %vm683_vm14, %v1852_v38, %v682_v35  ;;  %v633_v40 = vadd.f32 -2.4007583, %v631_v16 }
  0xf9   :  { %v655_v44 = vmul.f32 %v653_v32, %v1879_v58  ;;  %v1912_v1 = vsel %vm685_vm15, %v686_v30, %v684_v42  ;;  %v688_v49 = vmul.f32 -0.007784894, %v1907_v14  ;;  %v773_v51 = vadd.f32 0.5, %v771_v52  ;;  %p1292_p10 = pnand %p1291_p9, %p1285_p6 }
  0xfa   :  { %v573_v41 = vmul.f32 %v571_v33, %v1784_v24  ;;  %v689_v37 = vmul.f32 -0.007784894, %v1912_v1  ;;  %v708_v55 = vmul.f32 0.007784696, %v1907_v14  ;;  %v709_v25 = vmul.f32 0.007784696, %v1912_v1 }
  0xfb   :  { %v596_v56 = vmul.f32 %v594_v36, %v1771_v18  ;;  %v656_v27 = vadd.f32 3.7544086, %v654_v39  ;;  %v657_v20 = vadd.f32 3.7544086, %v655_v44  ;;  %v690_v59 = vadd.f32 -0.32239646, %v688_v49 }
  0xfc   :  { %v597_v38 = vmul.f32 %v595_v43, %v1784_v24  ;;  %v691_v47 = vadd.f32 -0.32239646, %v689_v37  ;;  %v710_v0 = vadd.f32 0.32246712, %v708_v55  ;;  %v711_v63 = vadd.f32 0.32246712, %v709_v25 }
  0xfd   :  { %v635_v62 = vmul.f32 %v633_v40, %v1879_v58  ;;  %v636_v46 = vadd.f32 -2.5497324, %v634_v22  ;;  %v692_v8 = vmul.f32 %v690_v59, %v1907_v14  ;;  %v1923_v48 = vmul.f32 1.1920929e-07, %v772_v50 }
  0xfe   :  { %v693_v53 = vmul.f32 %v691_v47, %v1912_v1  ;;  %v712_v2 = vmul.f32 %v710_v0, %v1907_v14  ;;  %v713_v29 = vmul.f32 %v711_v63, %v1912_v1  ;;  %v1928_v61 = vmul.f32 1.1920929e-07, %v773_v51 }
  0xff   :  { %v658_v3 = vmul.f32 %v656_v27, %v1842_v6  ;;  %v659_v4 = vmul.f32 %v657_v20, %v1879_v58  ;;  %v694_v11 = vadd.f32 -2.4007583, %v692_v8  ;;  %1112 = vlog2.f32 %v1923_v48 }
 0x100   :  { %v695_v15 = vadd.f32 -2.4007583, %v693_v53  ;;  %v714_v12 = vadd.f32 2.4451342, %v712_v2  ;;  %v715_v52 = vadd.f32 2.4451342, %v713_v29  ;;  %1114 = vlog2.f32 %v1928_v61 }
 0x101   :  { %v575_v31 = vadd.f32 -30.664799, %v573_v41  ;;  %v598_v17 = vadd.f32 1.0, %v596_v56  ;;  %v637_v5 = vadd.f32 -2.5497324, %v635_v62  ;;  %v696_v50 = vmul.f32 %v694_v11, %v1907_v14 }
 0x102   :  { %v599_v19 = vadd.f32 1.0, %v597_v38  ;;  %v697_v23 = vmul.f32 %v695_v15, %v1912_v1  ;;  %v716_v57 = vmul.f32 %v714_v12, %v1907_v14  ;;  %v717_v26 = vmul.f32 %v715_v52, %v1912_v1 }
 0x103   :  { %v638_v28 = vmul.f32 %v636_v46, %v1842_v6  ;;  %v660_v21 = vadd.f32 1.0, %v658_v3  ;;  %v661_v10 = vadd.f32 1.0, %v659_v4  ;;  %v698_v16 = vadd.f32 -2.5497324, %v696_v50 }
 0x104   :  { %v699_v32 = vadd.f32 -2.5497324, %v697_v23  ;;  %v718_v9 = vadd.f32 3.7544086, %v716_v57  ;;  %v719_v30 = vadd.f32 3.7544086, %v717_v26  ;;  %v576_v33 = vmul.f32 %v574_v13, %v1771_v18 }
 0x105   :  { %1116 = vrcp.f32 %v598_v17  ;;  %v639_v35 = vmul.f32 %v637_v5, %v1879_v58  ;;  %v700_v36 = vmul.f32 %v698_v16, %v1907_v14  ;;  %v577_v43 = vmul.f32 %v575_v31, %v1784_v24  ;;  %v738_v16 = vld [vmem:[#allocation9] sm:$0xff] }
 0x106   :  { %1118 = vrcp.f32 %v599_v19  ;;  %v701_v39 = vmul.f32 %v699_v32, %v1912_v1  ;;  %v720_v44 = vmul.f32 %v718_v9, %v1907_v14  ;;  %v721_v45 = vmul.f32 %v719_v30, %v1912_v1  ;;  %v739_v32 = vld [vmem:[#allocation9 + $0x8] sm:$0xff] }
 0x107   :  { %v640_v22 = vadd.f32 4.3746643, %v638_v28  ;;  %1120 = vrcp.f32 %v660_v21  ;;  %v702_v42 = vadd.f32 4.3746643, %v700_v36  ;;  %v641_v51 = vadd.f32 4.3746643, %v639_v35 }
 0x108   :  { %1122 = vrcp.f32 %v661_v10  ;;  %v703_v40 = vadd.f32 4.3746643, %v701_v39  ;;  %v722_v18 = vadd.f32 1.0, %v720_v44  ;;  %v723_v13 = vadd.f32 1.0, %v721_v45 }
 0x109   :  { %v1113_v49 = vpop.eup %1112  ;;  %v704_v41 = vmul.f32 %v702_v42, %v1907_v14  ;;  %v578_v25 = vadd.f32 2.5066283, %v576_v33  ;;  %v579_v56 = vadd.f32 2.5066283, %v577_v43  ;;  %v642_v24 = vmul.f32 %v640_v22, %v1842_v6 }
 0x10a   :  { %v1115_v37 = vpop.eup %1114  ;;  %v705_v55 = vmul.f32 %v703_v40, %v1912_v1  ;;  %1124 = vrcp.f32 %v722_v18  ;;  %v1950_v27 = vadd.f32 -0.5, %v1923_v48  ;;  %v827_v20 = vmul.f32 0.6931472, %v1113_v49 }
 0x10b   :  { %1126 = vrcp.f32 %v723_v13  ;;  %v643_v59 = vmul.f32 %v641_v51, %v1879_v58  ;;  %v706_v38 = vadd.f32 2.938164, %v704_v41  ;;  %v1954_v47 = vadd.f32 -0.5, %v1928_v61 }
 0x10c   :  { %v829_v14 = vmul.f32 0.6931472, %v1115_v37  ;;  %v707_v0 = vadd.f32 2.938164, %v705_v55  ;;  %v1956_v63 = vmul.f32 -2.0, %v827_v20  ;;  %v886_v1 = vsub.f32 1.0, %v1923_v48 }
 0x10d   :  { %v600_v46 = vmul.f32 %v1751_v7, %v578_v25  ;;  %v887_v8 = vsub.f32 1.0, %v1928_v61  ;;  %v601_v58 = vmul.f32 %v1764_v54, %v579_v56  ;;  %v644_v2 = vadd.f32 2.938164, %v642_v24 }
 0x10e   :  { %v1960_v6 = vmul.f32 -2.0, %v829_v14  ;;  %v1966_v29 = vmul.f32 %v1950_v27, %v1950_v27  ;;  %1128 = vrsqrt.f32 %v1956_v63  ;;  %v645_v4 = vadd.f32 2.938164, %v643_v59 }
 0x10f   :  { %v1117_v62 = vpop.eup %1116  ;;  %v724_v11 = vsub.f32 0.0, %v706_v38  ;;  %v1971_v7 = vmul.f32 %v1954_v47, %v1954_v47  ;;  %v725_v12 = vsub.f32 0.0, %v707_v0  ;;  %vm730_vm0 = vcmp.lt.f32.partialorder %v1660_v60, 0.02425 }
 0x110   :  { %v1119_v53 = vpop.eup %1118  ;;  %1130 = vrsqrt.f32 %v1960_v6  ;;  %v603_v54 = vmul.f32 %v1117_v62, %v600_v46  ;;  %vm732_vm1 = vcmp.gt.f32.partialorder %v1660_v60, 0.97575  ;;  %vm733_vm2 = vcmp.gt.f32.partialorder %v1745_v34, 0.97575 }
 0x111   :  { %v1121_v3 = vpop.eup %1120  ;;  %1132 = vlog2.f32 %v886_v1  ;;  %v605_v31 = vmul.f32 %v1119_v53, %v601_v58  ;;  %v800_v23 = vmul.f32 -54.476097, %v1966_v29  ;;  %v801_v57 = vmul.f32 -54.476097, %v1971_v7 }
 0x112   :  { %v1123_v15 = vpop.eup %1122  ;;  %1134 = vlog2.f32 %v887_v8  ;;  %v663_v17 = vmul.f32 %v1121_v3, %v644_v2  ;;  %vm731_vm3 = vcmp.lt.f32.partialorder %v1745_v34, 0.02425  ;;  %vm834_vm4 = vcmp.eq.f32.partialorder %v1956_v63, inf }
 0x113   :  { %v665_v50 = vmul.f32 %v1123_v15, %v645_v4  ;;  %v802_v33 = vadd.f32 161.58583, %v800_v23  ;;  %v803_v35 = vadd.f32 161.58583, %v801_v57  ;;  %vm836_vm5 = vcmp.eq.f32.partialorder %v1956_v63, 0.0 }
 0x114   :  { %v1125_v52 = vpop.eup %1124  ;;  %v837_v44 = vand.u32 2147483648, %v1956_v63  ;;  %vm841_vm6 = vcmp.eq.f32.partialorder %v1960_v6, inf  ;;  %v844_v60 = vand.u32 2147483648, %v1960_v6  ;;  %v780_v40 = vmul.f32 -39.69683, %v1966_v29 }
 0x115   :  { %v1127_v5 = vpop.eup %1126  ;;  %v727_v19 = vmul.f32 %v1125_v52, %v724_v11  ;;  %vm843_vm7 = vcmp.eq.f32.partialorder %v1960_v6, 0.0  ;;  %v804_v49 = vmul.f32 %v802_v33, %v1966_v29  ;;  %v781_v37 = vmul.f32 -39.69683, %v1971_v7 }
 0x116   :  { %v729_v26 = vmul.f32 %v1127_v5, %v725_v12  ;;  %v805_v24 = vmul.f32 %v803_v35, %v1971_v7  ;;  %v782_v14 = vadd.f32 220.9461, %v780_v40 }
 0x117   :  { %v734_v28 = vsel %vm732_vm1, %v727_v19, %v603_v54  ;;  %v783_v62 = vadd.f32 220.9461, %v781_v37 }
 0x118   :  { %v735_v21 = vsel %vm733_vm2, %v729_v26, %v605_v31  ;;  %v736_v10 = vsel %vm730_vm0, %v663_v17, %v734_v28  ;;  %v1129_v36 = vpop.eup %1128  ;;  %v807_v8 = vadd.f32 -155.69897, %v805_v24 }
 0x119   :  { %v737_v9 = vsel %vm731_vm3, %v665_v50, %v735_v21  ;;  %v740_v30 = vmul.f32 0.01, %v736_v10  ;;  %v833_v43 = vmul.f32 %v1129_v36, %v1956_v63 }
 0x11a   :  { %v741_v39 = vmul.f32 0.01, %v737_v9  ;;  %v1131_v34 = vpop.eup %1130 }
 0x11b   :  { %v742_v45 = vadd.f32 %v740_v30, %v738_v16  ;;  %v1133_v22 = vpop.eup %1132  ;;  %v840_v18 = vmul.f32 %v1131_v34, %v1960_v6  ;;  %v835_v51 = vsel %vm834_vm4, %v1956_v63, %v833_v43  ;;  %v806_v63 = vadd.f32 -155.69897, %v804_v49 }
 0x11c   :  { %v743_v42 = vadd.f32 %v741_v39, %v739_v32  ;;  %v1135_v13 = vpop.eup %1134  ;;  %v889_v41 = vmul.f32 0.6931472, %v1133_v22  ;;  %v1998_v55 = vsel %vm836_vm5, %v837_v44, %v835_v51 }
 0x11d   :  { %744 = vst [vmem:[#allocation15] sm:$0xff] %v742_v45  ;;  %v842_v25 = vsel %vm841_vm6, %v1960_v6, %v840_v18  ;;  %v891_v56 = vmul.f32 0.6931472, %v1135_v13  ;;  %v866_v59 = vmul.f32 0.007784696, %v1998_v55 }
 0x11e   :  { %745 = vst [vmem:[#allocation15 + $0x8] sm:$0xff] %v743_v42  ;;  %v2004_v20 = vsel %vm843_vm7, %v844_v60, %v842_v25  ;;  %v892_v38 = vmul.f32 -2.0, %v889_v41  ;;  %v846_v6 = vmul.f32 -0.007784894, %v1998_v55 }
 0x11f   :  { %v867_v0 = vmul.f32 0.007784696, %v2004_v20  ;;  %v2008_v1 = vmul.f32 -2.0, %v891_v56  ;;  %v868_v46 = vadd.f32 0.32246712, %v866_v59 }
 0x120   :  { %1136 = vrsqrt.f32 %v892_v38 }
 0x121   :  { %1138 = vrsqrt.f32 %v2008_v1 }
 0x122   :  { %1295 = shalt.err (!%p1292_p10)
}
 0x123   :  { %s1296_s0 = scalar_lea.hbm %s2105_s7, 256 }
 0x124   :  { %p1297_p11 = scmp.ne.s32.totalorder %s2105_s7, %s1296_s0  ;;  %p1300_p12 = scmp.lt.u32.totalorder %s1296_s0, %s2105_s7 }
 0x126   :  { %p1302_p13 = pnand %p1300_p12, %p1297_p11 }
 0x128   :  { %1305 = shalt.err (!%p1302_p13)
}
 0x129   :  { %995 = dma.vmem_to_hbm [thread:$0]  %s993_s9, 256, %s2105_s7, [#allocation14]   ;;  %v784_v53 = vmul.f32 %v782_v14, %v1966_v29  ;;  %v869_v58 = vadd.f32 0.32246712, %v867_v0  ;;  %v808_v2 = vmul.f32 %v806_v63, %v1966_v29  ;;  %v847_v3 = vmul.f32 -0.007784894, %v2004_v20 }
 0x12a   :  { %v785_v4 = vmul.f32 %v783_v62, %v1971_v7  ;;  %v870_v11 = vmul.f32 %v868_v46, %v1998_v55  ;;  %v809_v15 = vmul.f32 %v807_v8, %v1971_v7  ;;  %v848_v12 = vadd.f32 -0.32239646, %v846_v6  ;;  %v1137_v19 = vpop.eup %1136  ;;  %s1347_s7 = smov [#allocation16]  }
 0x12b   :  { %v786_v54 = vadd.f32 -275.9285, %v784_v53  ;;  %v871_v52 = vmul.f32 %v869_v58, %v2004_v20  ;;  %v810_v31 = vadd.f32 66.801315, %v808_v2  ;;  %v849_v17 = vadd.f32 -0.32239646, %v847_v3  ;;  %v1139_v16 = vpop.eup %1138 }
 0x12c   :  { %v787_v5 = vadd.f32 -275.9285, %v785_v4  ;;  %v872_v50 = vadd.f32 2.4451342, %v870_v11  ;;  %v811_v23 = vadd.f32 66.801315, %v809_v15  ;;  %v850_v57 = vmul.f32 %v848_v12, %v1998_v55 }
 0x12d   :  { %vm896_vm8 = vcmp.eq.f32.partialorder %v892_v38, inf  ;;  %v899_v26 = vand.u32 2147483648, %v892_v38  ;;  %v788_v28 = vmul.f32 %v786_v54, %v1966_v29  ;;  %v873_v21 = vadd.f32 2.4451342, %v871_v52  ;;  %s1002_s1 = sshll.u32 %s1347_s7, 4  ;;  %s1003_s1 = int_to_ptr.vmem [resolvable:$true] %s1002_s1 }
 0x12e   :  { %v895_v10 = vmul.f32 %v1137_v19, %v892_v38  ;;  %vm898_vm9 = vcmp.eq.f32.partialorder %v892_v38, 0.0  ;;  %v812_v32 = vmul.f32 %v810_v31, %v1966_v29  ;;  %v851_v9 = vmul.f32 %v849_v17, %v2004_v20  ;;  %s1306_s30 = scalar_lea.vmem %s1003_s1, 256  ;;  %p1311_p1 = scmp.lt.s32.totalorder %s1003_s1, %s1003_s1 }
 0x12f   :  { %vm903_vm10 = vcmp.eq.f32.partialorder %v2008_v1, inf  ;;  %v906_v30 = vand.u32 2147483648, %v2008_v1  ;;  %v874_v33 = vmul.f32 %v872_v50, %v1998_v55  ;;  %v902_v36 = vmul.f32 %v1139_v16, %v2008_v1  ;;  %p1307_p0 = scmp.ne.s32.totalorder %s1003_s1, %s1306_s30  ;;  %p1312_p2 = scmp.lt.s32.totalorder %s1306_s30, %s1306_s30 }
 0x130   :  { %v897_v35 = vsel %vm896_vm8, %v892_v38, %v895_v10  ;;  %vm905_vm11 = vcmp.eq.f32.partialorder %v2008_v1, 0.0  ;;  %v789_v39 = vmul.f32 %v787_v5, %v1971_v7  ;;  %v813_v44 = vmul.f32 %v811_v23, %v1971_v7 }
 0x131   :  { %v852_v34 = vadd.f32 -2.4007583, %v850_v57  ;;  %v2042_v45 = vsel %vm898_vm9, %v899_v26, %v897_v35  ;;  %v790_v43 = vadd.f32 138.35776, %v788_v28  ;;  %v875_v60 = vmul.f32 %v873_v21, %v2004_v20  ;;  %p1313_p3 = por %p1312_p2, %p1311_p1 }
 0x132   :  { %v904_v22 = vsel %vm903_vm10, %v2008_v1, %v902_v36  ;;  %v908_v42 = vmul.f32 -0.007784894, %v2042_v45  ;;  %v814_v40 = vadd.f32 -13.280682, %v812_v32  ;;  %v853_v18 = vadd.f32 -2.4007583, %v851_v9 }
 0x133   :  { %v2047_v13 = vsel %vm905_vm11, %v906_v30, %v904_v22  ;;  %v928_v49 = vmul.f32 0.007784696, %v2042_v45  ;;  %v876_v51 = vadd.f32 3.7544086, %v874_v33  ;;  %v815_v25 = vadd.f32 -13.280682, %v813_v44  ;;  %p1314_p4 = pnand %p1313_p3, %p1307_p0 }
 0x134   :  { %v909_v41 = vmul.f32 -0.007784894, %v2047_v13  ;;  %v910_v37 = vadd.f32 -0.32239646, %v908_v42  ;;  %v854_v56 = vmul.f32 %v852_v34, %v1998_v55  ;;  %v929_v24 = vmul.f32 0.007784696, %v2047_v13 }
 0x135   :  { %v930_v59 = vadd.f32 0.32246712, %v928_v49  ;;  %v791_v38 = vadd.f32 138.35776, %v789_v39  ;;  %v877_v14 = vadd.f32 3.7544086, %v875_v60  ;;  %v816_v63 = vmul.f32 %v814_v40, %v1966_v29 }
 0x136   :  { %v911_v0 = vadd.f32 -0.32239646, %v909_v41  ;;  %v912_v1 = vmul.f32 %v910_v37, %v2042_v45  ;;  %v855_v62 = vmul.f32 %v853_v18, %v2004_v20  ;;  %v931_v46 = vadd.f32 0.32246712, %v929_v24 }
 0x137   :  { %v932_v8 = vmul.f32 %v930_v59, %v2042_v45  ;;  %v792_v6 = vmul.f32 %v790_v43, %v1966_v29  ;;  %v878_v53 = vmul.f32 %v876_v51, %v1998_v55  ;;  %v817_v3 = vmul.f32 %v815_v25, %v1971_v7 }
 0x138   :  { %v913_v58 = vmul.f32 %v911_v0, %v2047_v13  ;;  %v914_v2 = vadd.f32 -2.4007583, %v912_v1  ;;  %v856_v4 = vadd.f32 -2.5497324, %v854_v56  ;;  %v933_v11 = vmul.f32 %v931_v46, %v2047_v13 }
 0x139   :  { %v934_v15 = vadd.f32 2.4451342, %v932_v8  ;;  %v793_v12 = vmul.f32 %v791_v38, %v1971_v7  ;;  %v879_v54 = vmul.f32 %v877_v14, %v2004_v20  ;;  %v818_v17 = vadd.f32 1.0, %v816_v63 }
 0x13a   :  { %v915_v52 = vadd.f32 -2.4007583, %v913_v58  ;;  %v916_v31 = vmul.f32 %v914_v2, %v2042_v45  ;;  %v857_v5 = vadd.f32 -2.5497324, %v855_v62  ;;  %v935_v50 = vadd.f32 2.4451342, %v933_v11 }
 0x13b   :  { %v936_v19 = vmul.f32 %v934_v15, %v2042_v45  ;;  %v794_v23 = vadd.f32 -30.664799, %v792_v6  ;;  %v880_v57 = vadd.f32 1.0, %v878_v53  ;;  %v819_v21 = vadd.f32 1.0, %v817_v3  ;;  %v958_v15 = vld [vmem:[#allocation10] sm:$0xff] }
 0x13c   :  { %v917_v26 = vmul.f32 %v915_v52, %v2047_v13  ;;  %v918_v28 = vadd.f32 -2.5497324, %v916_v31  ;;  %v858_v10 = vmul.f32 %v856_v4, %v1998_v55  ;;  %v937_v16 = vmul.f32 %v935_v50, %v2047_v13  ;;  %v959_v31 = vld [vmem:[#allocation10 + $0x8] sm:$0xff] }
 0x13d   :  { %v938_v32 = vadd.f32 3.7544086, %v936_v19  ;;  %v795_v9 = vadd.f32 -30.664799, %v793_v12  ;;  %v881_v30 = vadd.f32 1.0, %v879_v54  ;;  %1140 = vrcp.f32 %v818_v17 }
 0x13e   :  { %v919_v33 = vadd.f32 -2.5497324, %v917_v26  ;;  %v920_v35 = vmul.f32 %v918_v28, %v2042_v45  ;;  %v859_v36 = vmul.f32 %v857_v5, %v2004_v20  ;;  %v939_v39 = vadd.f32 3.7544086, %v937_v16 }
 0x13f   :  { %v940_v44 = vmul.f32 %v938_v32, %v2042_v45  ;;  %v796_v34 = vmul.f32 %v794_v23, %v1966_v29  ;;  %1142 = vrcp.f32 %v880_v57  ;;  %v860_v22 = vadd.f32 4.3746643, %v858_v10 }
 0x140   :  { %v921_v43 = vmul.f32 %v919_v33, %v2047_v13  ;;  %v922_v60 = vadd.f32 4.3746643, %v920_v35  ;;  %1144 = vrcp.f32 %v819_v21  ;;  %v941_v42 = vmul.f32 %v939_v39, %v2047_v13 }
 0x141   :  { %v942_v40 = vadd.f32 1.0, %v940_v44  ;;  %v797_v18 = vmul.f32 %v795_v9, %v1971_v7  ;;  %1146 = vrcp.f32 %v881_v30  ;;  %v861_v41 = vadd.f32 4.3746643, %v859_v36 }
 0x142   :  { %v923_v49 = vadd.f32 4.3746643, %v921_v43  ;;  %v924_v51 = vmul.f32 %v922_v60, %v2042_v45  ;;  %v943_v37 = vadd.f32 1.0, %v941_v42  ;;  %v798_v25 = vadd.f32 2.5066283, %v796_v34 }
 0x143   :  { %1148 = vrcp.f32 %v942_v40  ;;  %v862_v56 = vmul.f32 %v860_v22, %v1998_v55  ;;  %v799_v24 = vadd.f32 2.5066283, %v797_v18  ;;  %v863_v38 = vmul.f32 %v861_v41, %v2004_v20 }
 0x144   :  { %v925_v29 = vmul.f32 %v923_v49, %v2047_v13  ;;  %1150 = vrcp.f32 %v943_v37  ;;  %v926_v59 = vadd.f32 2.938164, %v924_v51  ;;  %v820_v14 = vmul.f32 %v1950_v27, %v798_v25 }
 0x145   :  { %v864_v1 = vadd.f32 2.938164, %v862_v56  ;;  %v821_v45 = vmul.f32 %v1954_v47, %v799_v24  ;;  %v865_v8 = vadd.f32 2.938164, %v863_v38  ;;  %vm952_vm12 = vcmp.gt.f32.partialorder %v1923_v48, 0.97575 }
 0x146   :  { %v927_v7 = vadd.f32 2.938164, %v925_v29  ;;  %v944_v62 = vsub.f32 0.0, %v926_v59  ;;  %vm950_vm13 = vcmp.lt.f32.partialorder %v1923_v48, 0.02425 }
 0x147   :  { %v1141_v0 = vpop.eup %1140  ;;  %vm953_vm14 = vcmp.gt.f32.partialorder %v1928_v61, 0.97575  ;;  %vm951_vm15 = vcmp.lt.f32.partialorder %v1928_v61, 0.02425 }
 0x148   :  { %v823_v13 = vmul.f32 %v1141_v0, %v820_v14  ;;  %v945_v53 = vsub.f32 0.0, %v927_v7 }
 0x149   :  { %v1143_v63 = vpop.eup %1142 }
 0x14a   :  { %v1145_v46 = vpop.eup %1144  ;;  %v883_v58 = vmul.f32 %v1143_v63, %v864_v1 }
 0x14b   :  { %v1147_v6 = vpop.eup %1146  ;;  %v825_v2 = vmul.f32 %v1145_v46, %v821_v45 }
 0x14c   :  { %v885_v3 = vmul.f32 %v1147_v6, %v865_v8 }
 0x14d   :  { %v1149_v55 = vpop.eup %1148 }
 0x14e   :  { %v947_v20 = vmul.f32 %v1149_v55, %v944_v62  ;;  %v1151_v27 = vpop.eup %1150 }
 0x14f   :  { %v949_v4 = vmul.f32 %v1151_v27, %v945_v53 }
 0x150   :  { %v954_v47 = vsel %vm952_vm12, %v947_v20, %v823_v13 }
 0x151   :  { %v956_v11 = vsel %vm950_vm13, %v883_v58, %v954_v47  ;;  %v955_v12 = vsel %vm953_vm14, %v949_v4, %v825_v2 }
 0x152   :  { %v960_v54 = vmul.f32 0.01, %v956_v11  ;;  %v957_v52 = vsel %vm951_vm15, %v885_v3, %v955_v12 }
 0x153   :  { %v961_v17 = vmul.f32 0.01, %v957_v52 }
 0x154   :  { %v962_v5 = vadd.f32 %v960_v54, %v958_v15 }
 0x155   :  { %v963_v50 = vadd.f32 %v961_v17, %v959_v31 }
 0x156   :  { %964 = vst [vmem:[#allocation16] sm:$0xff] %v962_v5 }
 0x157   :  { %965 = vst [vmem:[#allocation16 + $0x8] sm:$0xff] %v963_v50 }
 0x158   :  { %1317 = shalt.err (!%p1314_p4)
}
 0x159   :  { %s1318_s20 = scalar_lea.hbm %s2106_s8, 256 }
 0x15a   :  { %p1319_p5 = scmp.ne.s32.totalorder %s2106_s8, %s1318_s20  ;;  %p1322_p6 = scmp.lt.u32.totalorder %s1318_s20, %s2106_s8 }
 0x15c   :  { %p1324_p7 = pnand %p1322_p6, %p1319_p5 }
 0x15e   :  { %1327 = shalt.err (!%p1324_p7)
}
 0x15f   :  { %1005 = dma.vmem_to_hbm [thread:$0]  %s1003_s1, 256, %s2106_s8, [#allocation17]  }
 0x160   :  { %1334 = dma.done.wait [#allocation6], 256  }
 0x161   :  { %1335 = vsyncadd [#allocation6], 4294967040 }
 0x162   :  { %1336 = dma.done.wait [#allocation14], 512  }
 0x163   :  { %1337 = vsyncadd [#allocation14], 4294966784 }
 0x164   :  { %1338 = dma.done.wait [#allocation17], 256  }
 0x165   :  { %1339 = vsyncadd [#allocation17], 4294967040 }
 0x166   :  { %1018 = vsyncpa [#allocation5], 1 }
 0x167   :  { %1019 = vsyncpa [#allocation8], 1 }
 0x168   :  { %1020 = vsyncpa [#allocation11], 1 }
 0x169   :  { %1021 = vsyncpa [#allocation6], 1 }
 0x16a   :  { %1022 = vsyncpa [#allocation14], 1 }
 0x16b   :  { %1023 = vsyncpa [#allocation17], 1 }

</bundles_post_ra>
